<compile_context>
chip_gen: v6e
topology: v6e:2x2x1
jax: 0.10.0
libtpu: 0.0.40
codegen_flags: <defaults>
</compile_context>

<pallas_src>
import math

import jax
import jax.numpy as jnp
import numpy as np
from jax.experimental import pallas as pl
from jax.experimental.pallas import tpu as pltpu

# ---- hyperparameters (small, self-consistent stand-ins for the unknown globals) ----
IMG_SIZE = 16          # img_size
NUM_PATCHES = 16       # NUM_PATCHES_GCN (4x4 grid)
IN_CHANNELS = 3        # in_channels
HIDDEN_DIM = 32        # HIDDEN_DIM_GCN
ENCODE_DIM = 32        # ENCODE_DIM_GCN
GCN_LAYERS = 2         # GCN_LAYER
USE_SIN_PE = True      # SIN_PE_GCN
BATCH = 2

GRID_N = int(math.sqrt(NUM_PATCHES))
PATCH = IMG_SIZE // GRID_N
PATCH_DIM = IN_CHANNELS * PATCH * PATCH

# Lane-padded sizes: all matmul K/N dims become multiples of 128 so every
# vld/vst is unmasked and tile-aligned.
LANE = 128
PD_PAD = ((PATCH_DIM + LANE - 1) // LANE) * LANE     # 48  -> 128
H_PAD = ((HIDDEN_DIM + LANE - 1) // LANE) * LANE     # 32  -> 128
E_PAD = ((ENCODE_DIM + LANE - 1) // LANE) * LANE     # 32  -> 128

# ---- tiling ----
BT = 8                         # samples per 128-row sub-tile (8 * 16 patches = 128 MXU rows)
SUB_ROWS = BT * NUM_PATCHES    # 128
SUBS = 2                       # sub-tiles per grid step -> 256 rows/step (v6e/v7x 256-wide MXU)
STEP_ROWS = SUBS * SUB_ROWS    # 256
SAMPLES_PER_STEP = SUBS * BT   # 16
MIN_STEPS = 2                  # >= 2 grid steps so both v7x TensorCores get work


# ------------------------------------------------------------------ glue helpers
def make_sin_pe(num_patches, dim):
    position = np.arange(num_patches, dtype=np.float32)[:, None]
    div_term = np.exp(np.arange(0, dim, 2, dtype=np.float32) * (-math.log(10000.0) / dim))
    pe = np.zeros((num_patches, dim), dtype=np.float32)
    pe[:, 0::2] = np.sin(position * div_term)
    pe[:, 1::2] = np.cos(position * div_term)
    return jnp.asarray(pe)


def make_normalized_adjacency(num_patches):
    """Dense A_hat = D^{-1/2} (A + I) D^{-1/2}: torch_geometric GCNConv with
    add_self_loops=True, normalize=True on the 4-neighbor grid graph."""
    gs = int(math.sqrt(num_patches))
    A = np.zeros((num_patches, num_patches), dtype=np.float32)
    for i in range(gs):
        for j in range(gs):
            cur = i * gs + j
            if j < gs - 1:
                A[cur, cur + 1] = 1.0
                A[cur + 1, cur] = 1.0
            if i < gs - 1:
                A[cur, cur + gs] = 1.0
                A[cur + gs, cur] = 1.0
    A = A + np.eye(num_patches, dtype=np.float32)   # self loops
    deg = A.sum(axis=1)
    d_inv_sqrt = 1.0 / np.sqrt(deg)
    A_hat = d_inv_sqrt[:, None] * A * d_inv_sqrt[None, :]
    return jnp.asarray(A_hat)


def extract_patches(x):
    """(B, C, H, W) -> (B, N, C*p*p), matching the PyTorch unfold/unfold/permute."""
    B, C, H, W = x.shape
    x = x.reshape(B, C, GRID_N, PATCH, GRID_N, PATCH)
    x = jnp.transpose(x, (0, 2, 4, 1, 3, 5))          # (B, gh, gw, C, p, p)
    return x.reshape(B, NUM_PATCHES, C * PATCH * PATCH)


def _pad_to(x, shape):
    pads = [(0, s - d) for d, s in zip(x.shape, shape)]
    return jnp.pad(x, pads)


def _full_spec(shape):
    nd = len(shape)
    return pl.BlockSpec(shape, lambda i, nd=nd: (0,) * nd)


# ------------------------------------------------------------------ Pallas kernel
def gcn_encoder_kernel(patches_ref,   # (STEP_ROWS, PD_PAD)     bf16
                       pe_ref,        # (SUB_ROWS, H_PAD)       f32   (pe + b_emb, tiled x BT)
                       a_ref,         # (SUB_ROWS, SUB_ROWS)    bf16  block-diag A_hat (8 samples)
                       w_emb_ref,     # (PD_PAD, H_PAD)         bf16
                       w_gcn_ref,     # (L, H_PAD, H_PAD)       bf16
                       b_gcn_ref,     # (L, 1, H_PAD)           f32
                       w_out_ref,     # (H_PAD, E_PAD)          bf16
                       b_out_ref,     # (1, E_PAD)              f32
                       out_ref):      # (STEP_ROWS, E_PAD)      bf16
    a_big = a_ref[...]
    w_emb = w_emb_ref[...]
    w_out = w_out_ref[...]
    b_out = b_out_ref[...]
    pe = pe_ref[...]

    # Static unroll over the 128-row sub-tiles of this grid step; each sub-tile
    # is 8 samples and reuses the same resident 128x128 block-diag adjacency.
    for sub in range(SUBS):
        r0 = sub * SUB_ROWS
        x = jnp.dot(patches_ref[pl.ds(r0, SUB_ROWS), :], w_emb,
                    preferred_element_type=jnp.float32)                     # (128, H_PAD)
        x = x + pe                                                          # pos-enc + embed bias

        for l in range(GCN_LAYERS):                                         # static unroll
            xw = jnp.dot(x.astype(jnp.bfloat16), w_gcn_ref[l],
                         preferred_element_type=jnp.float32)                # X W^T
            x = jnp.dot(a_big, xw.astype(jnp.bfloat16),
                        preferred_element_type=jnp.float32) + b_gcn_ref[l]  # A_hat X W^T + b
            x = jnp.maximum(x, 0.0)                                         # ReLU

        y = jnp.dot(x.astype(jnp.bfloat16), w_out,
                    preferred_element_type=jnp.float32) + b_out
        out_ref[pl.ds(r0, SUB_ROWS), :] = y.astype(out_ref.dtype)           # lane-dense bf16 store


# ------------------------------------------------------------------ one-time constant prep
def prepare_constants(params):
    """All padding / casting / kron / tile done ONCE at init (hoisted out of forward)."""
    pe_bias = _pad_to(params["pe"] + params["b_emb"], (NUM_PATCHES, H_PAD))
    pe_tiled = jnp.tile(pe_bias, (BT, 1)).astype(jnp.float32)               # (SUB_ROWS, H_PAD)

    # block-diagonal normalized adjacency == torch_geometric Batch of BT graphs
    a_big = jnp.kron(jnp.eye(BT, dtype=jnp.float32),
                     params["a_hat"]).astype(jnp.bfloat16)                  # (SUB_ROWS, SUB_ROWS)

    consts = {
        "pe_tiled": pe_tiled,
        "a_big": a_big,
        "w_emb": _pad_to(params["w_emb"], (PD_PAD, H_PAD)).astype(jnp.bfloat16),
        "w_gcn": _pad_to(params["w_gcn"], (GCN_LAYERS, H_PAD, H_PAD)).astype(jnp.bfloat16),
        "b_gcn": _pad_to(params["b_gcn"], (GCN_LAYERS, 1, H_PAD)).astype(jnp.float32),
        "w_out": _pad_to(params["w_out"], (H_PAD, E_PAD)).astype(jnp.bfloat16),
        "b_out": _pad_to(params["b_out"], (1, E_PAD)).astype(jnp.float32),
    }
    return jax.tree_util.tree_map(jnp.asarray, consts)


# ------------------------------------------------------------------ forward
def gcn_encoder_forward(x_img, consts):
    B = x_img.shape[0]
    steps = max(pl.cdiv(B, SAMPLES_PER_STEP), MIN_STEPS)
    B_pad = steps * SAMPLES_PER_STEP
    total_rows = B_pad * NUM_PATCHES

    # per-call prep: only the input-derived patches (pad batch + lanes, cast)
    patches = extract_patches(x_img).astype(jnp.float32)                    # (B, N, PD)
    patches = jnp.pad(patches, ((0, B_pad - B), (0, 0), (0, PD_PAD - PATCH_DIM)))
    patches2d = patches.reshape(total_rows, PD_PAD).astype(jnp.bfloat16)

    operands = (patches2d, consts["pe_tiled"], consts["a_big"], consts["w_emb"],
                consts["w_gcn"], consts["b_gcn"], consts["w_out"], consts["b_out"])

    # ---- cost estimate (matmul flops + HBM bytes) ----
    flops_per_step = (2 * STEP_ROWS * PD_PAD * H_PAD
                      + GCN_LAYERS * (2 * STEP_ROWS * H_PAD * H_PAD
                                      + 2 * SUBS * SUB_ROWS * SUB_ROWS * H_PAD)
                      + 2 * STEP_ROWS * H_PAD * E_PAD)
    bytes_accessed = (sum(int(a.size) * a.dtype.itemsize for a in operands)
                      + total_rows * E_PAD * 2)
    cost = pl.CostEstimate(flops=steps * flops_per_step, transcendentals=0,
                           bytes_accessed=bytes_accessed)

    out2d = pl.pallas_call(
        gcn_encoder_kernel,
        out_shape=jax.ShapeDtypeStruct((total_rows, E_PAD), jnp.bfloat16),
        grid_spec=pltpu.PrefetchScalarGridSpec(
            num_scalar_prefetch=0,
            grid=(steps,),
            in_specs=[
                pl.BlockSpec((STEP_ROWS, PD_PAD), lambda i: (i, 0)),   # patches tile (2 sub-tiles)
                _full_spec((SUB_ROWS, H_PAD)),                         # pe + b_emb (tiled x BT)
                _full_spec((SUB_ROWS, SUB_ROWS)),                      # block-diag A_hat
                _full_spec((PD_PAD, H_PAD)),                           # w_emb
                _full_spec((GCN_LAYERS, H_PAD, H_PAD)),                # w_gcn (stacked)
                _full_spec((GCN_LAYERS, 1, H_PAD)),                    # b_gcn (stacked)
                _full_spec((H_PAD, E_PAD)),                            # w_out
                _full_spec((1, E_PAD)),                                # b_out
            ],
            out_specs=pl.BlockSpec((STEP_ROWS, E_PAD), lambda i: (i, 0)),  # lane-dense bf16 slab
        ),
        compiler_params=pltpu.CompilerParams(dimension_semantics=("parallel",)),
        cost_estimate=cost,
    )(*operands)

    out = out2d.reshape(B_pad, NUM_PATCHES, E_PAD)
    return out[:B, :, :ENCODE_DIM].astype(jnp.float32)


# ------------------------------------------------------------------ param init
def init_params(key):
    ks = jax.random.split(key, 4)

    def linear_init(k, fan_in, fan_out):
        bound = 1.0 / math.sqrt(fan_in)
        kw, kb = jax.random.split(k)
        w = jax.random.uniform(kw, (fan_in, fan_out), jnp.float32, -bound, bound)  # stored as W^T
        b = jax.random.uniform(kb, (1, fan_out), jnp.float32, -bound, bound)
        return w, b

    w_emb, b_emb = linear_init(ks[0], PATCH_DIM, HIDDEN_DIM)
    w_out, b_out = linear_init(ks[1], HIDDEN_DIM, ENCODE_DIM)

    # GCNConv weights: glorot-style, stored pre-transposed as (in, out); bias zero-init
    glorot = math.sqrt(6.0 / (HIDDEN_DIM + HIDDEN_DIM))
    w_gcn = jax.random.uniform(ks[2], (GCN_LAYERS, HIDDEN_DIM, HIDDEN_DIM),
                               jnp.float32, -glorot, glorot)
    b_gcn = jnp.zeros((GCN_LAYERS, 1, HIDDEN_DIM), jnp.float32)

    pe = make_sin_pe(NUM_PATCHES, HIDDEN_DIM) if USE_SIN_PE else \
        jax.random.normal(ks[3], (NUM_PATCHES, HIDDEN_DIM), jnp.float32)

    return {
        "pe": pe,
        "a_hat": make_normalized_adjacency(NUM_PATCHES),
        "w_emb": w_emb, "b_emb": b_emb,
        "w_gcn": w_gcn, "b_gcn": b_gcn,
        "w_out": w_out, "b_out": b_out,
    }


# ------------------------------------------------------------------ pure-JAX reference (f32)
def reference_forward(x_img, params):
    x = extract_patches(x_img).astype(jnp.float32)
    x = x @ params["w_emb"] + params["b_emb"] + params["pe"][None]
    for l in range(GCN_LAYERS):
        xw = x @ params["w_gcn"][l]
        x = jnp.einsum("ij,bjh->bih", params["a_hat"], xw) + params["b_gcn"][l]
        x = jnp.maximum(x, 0.0)
    return x @ params["w_out"] + params["b_out"]


if __name__ == "__main__":
    key = jax.random.PRNGKey(0)
    k_params, k_x = jax.random.split(key)
    params = init_params(k_params)
    consts = prepare_constants(params)          # hoisted: runs exactly once
    x_img = jax.random.normal(k_x, (BATCH, IN_CHANNELS, IMG_SIZE, IMG_SIZE), jnp.float32)

    fwd = jax.jit(gcn_encoder_forward)
    out = jax.block_until_ready(fwd(x_img, consts))

    ref = reference_forward(x_img, params)
    assert out.shape == (BATCH, NUM_PATCHES, ENCODE_DIM)
    # bf16 MXU operands + bf16 output store with f32 accumulation -> mixed-precision tolerance
    max_err = float(jnp.max(jnp.abs(out - ref)))
    assert jnp.allclose(out, ref, atol=5e-2, rtol=5e-2), f"max abs err = {max_err}"
    print("KERNEL_OK")
</pallas_src>

<mosaic_0001>
module attributes {stable_mosaic.version = 11 : i64} {
  func.func @gcn_encoder_kernel(%arg0: i32, %arg1: memref<256x128xbf16, #tpu.memory_space<vmem>>, %arg2: memref<128x128xf32, #tpu.memory_space<vmem>>, %arg3: memref<128x128xbf16, #tpu.memory_space<vmem>>, %arg4: memref<128x128xbf16, #tpu.memory_space<vmem>>, %arg5: memref<2x128x128xbf16, #tpu.memory_space<vmem>>, %arg6: memref<2x1x128xf32, #tpu.memory_space<vmem>>, %arg7: memref<128x128xbf16, #tpu.memory_space<vmem>>, %arg8: memref<1x128xf32, #tpu.memory_space<vmem>>, %arg9: memref<256x128xbf16, #tpu.memory_space<vmem>>) attributes {dimension_semantics = [#tpu.dimension_semantics<parallel>], iteration_bounds = array<i64: 2>, scalar_prefetch = 0 : i64, scratch_operands = 0 : i64, tpu.core_type = #tpu.core_type<tc>, window_params = [{transform_indices = @transform_0, window_bounds = array<i64: 256, 128>}, {pipeline_mode = #tpu.pipeline_mode<synchronous>, transform_indices = @transform_1, window_bounds = array<i64: 128, 128>}, {pipeline_mode = #tpu.pipeline_mode<synchronous>, transform_indices = @transform_2, window_bounds = array<i64: 128, 128>}, {pipeline_mode = #tpu.pipeline_mode<synchronous>, transform_indices = @transform_3, window_bounds = array<i64: 128, 128>}, {pipeline_mode = #tpu.pipeline_mode<synchronous>, transform_indices = @transform_4, window_bounds = array<i64: 2, 128, 128>}, {pipeline_mode = #tpu.pipeline_mode<synchronous>, transform_indices = @transform_5, window_bounds = array<i64: 2, 1, 128>}, {pipeline_mode = #tpu.pipeline_mode<synchronous>, transform_indices = @transform_6, window_bounds = array<i64: 128, 128>}, {pipeline_mode = #tpu.pipeline_mode<synchronous>, transform_indices = @transform_7, window_bounds = array<i64: 1, 128>}, {transform_indices = @transform_8, window_bounds = array<i64: 256, 128>}]} {
    %c0 = arith.constant 0 : index
    %c0_0 = arith.constant 0 : index
    %0 = vector.load %arg3[%c0, %c0_0] : memref<128x128xbf16, #tpu.memory_space<vmem>>, vector<128x128xbf16>
    %c0_1 = arith.constant 0 : index
    %c0_2 = arith.constant 0 : index
    %1 = vector.load %arg4[%c0_1, %c0_2] : memref<128x128xbf16, #tpu.memory_space<vmem>>, vector<128x128xbf16>
    %c0_3 = arith.constant 0 : index
    %c0_4 = arith.constant 0 : index
    %2 = vector.load %arg7[%c0_3, %c0_4] : memref<128x128xbf16, #tpu.memory_space<vmem>>, vector<128x128xbf16>
    %c0_5 = arith.constant 0 : index
    %c0_6 = arith.constant 0 : index
    %3 = vector.load %arg8[%c0_5, %c0_6] : memref<1x128xf32, #tpu.memory_space<vmem>>, vector<1x128xf32>
    %c0_7 = arith.constant 0 : index
    %c0_8 = arith.constant 0 : index
    %4 = vector.load %arg2[%c0_7, %c0_8] : memref<128x128xf32, #tpu.memory_space<vmem>>, vector<128x128xf32>
    %c0_9 = arith.constant 0 : index
    %c0_10 = arith.constant 0 : index
    %5 = vector.load %arg1[%c0_9, %c0_10] : memref<256x128xbf16, #tpu.memory_space<vmem>>, vector<128x128xbf16>
    %cst = arith.constant dense<0.000000e+00> : vector<128x128xf32>
    %6 = tpu.matmul %5, %1, %cst {dimension_numbers = #tpu.dot_dimension_numbers<[1], [0], [0], [1], [0, 0, 1, 1], [], []>} : vector<128x128xbf16>, vector<128x128xbf16>, vector<128x128xf32> -> vector<128x128xf32>
    %7 = arith.addf %6, %4 : vector<128x128xf32>
    %8 = arith.truncf %7 : vector<128x128xf32> to vector<128x128xbf16>
    %c0_11 = arith.constant 0 : index
    %c0_12 = arith.constant 0 : index
    %c0_13 = arith.constant 0 : index
    %9 = vector.load %arg5[%c0_11, %c0_12, %c0_13] : memref<2x128x128xbf16, #tpu.memory_space<vmem>>, vector<1x128x128xbf16>
    %10 = vector.shape_cast %9 : vector<1x128x128xbf16> to vector<128x128xbf16>
    %cst_14 = arith.constant dense<0.000000e+00> : vector<128x128xf32>
    %11 = tpu.matmul %8, %10, %cst_14 {dimension_numbers = #tpu.dot_dimension_numbers<[1], [0], [0], [1], [0, 0, 1, 1], [], []>} : vector<128x128xbf16>, vector<128x128xbf16>, vector<128x128xf32> -> vector<128x128xf32>
    %12 = arith.truncf %11 : vector<128x128xf32> to vector<128x128xbf16>
    %cst_15 = arith.constant dense<0.000000e+00> : vector<128x128xf32>
    %13 = tpu.matmul %0, %12, %cst_15 {dimension_numbers = #tpu.dot_dimension_numbers<[1], [0], [0], [1], [0, 0, 1, 1], [], []>} : vector<128x128xbf16>, vector<128x128xbf16>, vector<128x128xf32> -> vector<128x128xf32>
    %c0_16 = arith.constant 0 : index
    %c0_17 = arith.constant 0 : index
    %c0_18 = arith.constant 0 : index
    %14 = vector.load %arg6[%c0_16, %c0_17, %c0_18] : memref<2x1x128xf32, #tpu.memory_space<vmem>>, vector<1x1x128xf32>
    %15 = vector.shape_cast %14 : vector<1x1x128xf32> to vector<1x128xf32>
    %16 = vector.broadcast %15 : vector<1x128xf32> to vector<128x128xf32>
    %17 = arith.addf %13, %16 : vector<128x128xf32>
    %cst_19 = arith.constant 0.000000e+00 : f32
    %18 = vector.broadcast %cst_19 : f32 to vector<128x128xf32>
    %19 = arith.maximumf %17, %18 : vector<128x128xf32>
    %20 = arith.truncf %19 : vector<128x128xf32> to vector<128x128xbf16>
    %c1 = arith.constant 1 : index
    %c0_20 = arith.constant 0 : index
    %c0_21 = arith.constant 0 : index
    %21 = vector.load %arg5[%c1, %c0_20, %c0_21] : memref<2x128x128xbf16, #tpu.memory_space<vmem>>, vector<1x128x128xbf16>
    %22 = vector.shape_cast %21 : vector<1x128x128xbf16> to vector<128x128xbf16>
    %cst_22 = arith.constant dense<0.000000e+00> : vector<128x128xf32>
    %23 = tpu.matmul %20, %22, %cst_22 {dimension_numbers = #tpu.dot_dimension_numbers<[1], [0], [0], [1], [0, 0, 1, 1], [], []>} : vector<128x128xbf16>, vector<128x128xbf16>, vector<128x128xf32> -> vector<128x128xf32>
    %24 = arith.truncf %23 : vector<128x128xf32> to vector<128x128xbf16>
    %cst_23 = arith.constant dense<0.000000e+00> : vector<128x128xf32>
    %25 = tpu.matmul %0, %24, %cst_23 {dimension_numbers = #tpu.dot_dimension_numbers<[1], [0], [0], [1], [0, 0, 1, 1], [], []>} : vector<128x128xbf16>, vector<128x128xbf16>, vector<128x128xf32> -> vector<128x128xf32>
    %c1_24 = arith.constant 1 : index
    %c0_25 = arith.constant 0 : index
    %c0_26 = arith.constant 0 : index
    %26 = vector.load %arg6[%c1_24, %c0_25, %c0_26] : memref<2x1x128xf32, #tpu.memory_space<vmem>>, vector<1x1x128xf32>
    %27 = vector.shape_cast %26 : vector<1x1x128xf32> to vector<1x128xf32>
    %28 = vector.broadcast %27 : vector<1x128xf32> to vector<128x128xf32>
    %29 = arith.addf %25, %28 : vector<128x128xf32>
    %cst_27 = arith.constant 0.000000e+00 : f32
    %30 = vector.broadcast %cst_27 : f32 to vector<128x128xf32>
    %31 = arith.maximumf %29, %30 : vector<128x128xf32>
    %32 = arith.truncf %31 : vector<128x128xf32> to vector<128x128xbf16>
    %cst_28 = arith.constant dense<0.000000e+00> : vector<128x128xf32>
    %33 = tpu.matmul %32, %2, %cst_28 {dimension_numbers = #tpu.dot_dimension_numbers<[1], [0], [0], [1], [0, 0, 1, 1], [], []>} : vector<128x128xbf16>, vector<128x128xbf16>, vector<128x128xf32> -> vector<128x128xf32>
    %34 = vector.broadcast %3 : vector<1x128xf32> to vector<128x128xf32>
    %35 = arith.addf %33, %34 : vector<128x128xf32>
    %36 = arith.truncf %35 : vector<128x128xf32> to vector<128x128xbf16>
    %c0_29 = arith.constant 0 : index
    %c0_30 = arith.constant 0 : index
    %37 = vector.load %arg9[%c0_29, %c0_30] : memref<256x128xbf16, #tpu.memory_space<vmem>>, vector<128x128xbf16>
    tpu.vector_store %arg9[%c0_29, %c0_30], %36 {strides = array<i32>} : memref<256x128xbf16, #tpu.memory_space<vmem>>, vector<128x128xbf16>,
    %c128 = arith.constant 128 : index
    %c0_31 = arith.constant 0 : index
    %38 = vector.load %arg1[%c128, %c0_31] : memref<256x128xbf16, #tpu.memory_space<vmem>>, vector<128x128xbf16>
    %cst_32 = arith.constant dense<0.000000e+00> : vector<128x128xf32>
    %39 = tpu.matmul %38, %1, %cst_32 {dimension_numbers = #tpu.dot_dimension_numbers<[1], [0], [0], [1], [0, 0, 1, 1], [], []>} : vector<128x128xbf16>, vector<128x128xbf16>, vector<128x128xf32> -> vector<128x128xf32>
    %40 = arith.addf %39, %4 : vector<128x128xf32>
    %41 = arith.truncf %40 : vector<128x128xf32> to vector<128x128xbf16>
    %c0_33 = arith.constant 0 : index
    %c0_34 = arith.constant 0 : index
    %c0_35 = arith.constant 0 : index
    %42 = vector.load %arg5[%c0_33, %c0_34, %c0_35] : memref<2x128x128xbf16, #tpu.memory_space<vmem>>, vector<1x128x128xbf16>
    %43 = vector.shape_cast %42 : vector<1x128x128xbf16> to vector<128x128xbf16>
    %cst_36 = arith.constant dense<0.000000e+00> : vector<128x128xf32>
    %44 = tpu.matmul %41, %43, %cst_36 {dimension_numbers = #tpu.dot_dimension_numbers<[1], [0], [0], [1], [0, 0, 1, 1], [], []>} : vector<128x128xbf16>, vector<128x128xbf16>, vector<128x128xf32> -> vector<128x128xf32>
    %45 = arith.truncf %44 : vector<128x128xf32> to vector<128x128xbf16>
    %cst_37 = arith.constant dense<0.000000e+00> : vector<128x128xf32>
    %46 = tpu.matmul %0, %45, %cst_37 {dimension_numbers = #tpu.dot_dimension_numbers<[1], [0], [0], [1], [0, 0, 1, 1], [], []>} : vector<128x128xbf16>, vector<128x128xbf16>, vector<128x128xf32> -> vector<128x128xf32>
    %c0_38 = arith.constant 0 : index
    %c0_39 = arith.constant 0 : index
    %c0_40 = arith.constant 0 : index
    %47 = vector.load %arg6[%c0_38, %c0_39, %c0_40] : memref<2x1x128xf32, #tpu.memory_space<vmem>>, vector<1x1x128xf32>
    %48 = vector.shape_cast %47 : vector<1x1x128xf32> to vector<1x128xf32>
    %49 = vector.broadcast %48 : vector<1x128xf32> to vector<128x128xf32>
    %50 = arith.addf %46, %49 : vector<128x128xf32>
    %cst_41 = arith.constant 0.000000e+00 : f32
    %51 = vector.broadcast %cst_41 : f32 to vector<128x128xf32>
    %52 = arith.maximumf %50, %51 : vector<128x128xf32>
    %53 = arith.truncf %52 : vector<128x128xf32> to vector<128x128xbf16>
    %c1_42 = arith.constant 1 : index
    %c0_43 = arith.constant 0 : index
    %c0_44 = arith.constant 0 : index
    %54 = vector.load %arg5[%c1_42, %c0_43, %c0_44] : memref<2x128x128xbf16, #tpu.memory_space<vmem>>, vector<1x128x128xbf16>
    %55 = vector.shape_cast %54 : vector<1x128x128xbf16> to vector<128x128xbf16>
    %cst_45 = arith.constant dense<0.000000e+00> : vector<128x128xf32>
    %56 = tpu.matmul %53, %55, %cst_45 {dimension_numbers = #tpu.dot_dimension_numbers<[1], [0], [0], [1], [0, 0, 1, 1], [], []>} : vector<128x128xbf16>, vector<128x128xbf16>, vector<128x128xf32> -> vector<128x128xf32>
    %57 = arith.truncf %56 : vector<128x128xf32> to vector<128x128xbf16>
    %cst_46 = arith.constant dense<0.000000e+00> : vector<128x128xf32>
    %58 = tpu.matmul %0, %57, %cst_46 {dimension_numbers = #tpu.dot_dimension_numbers<[1], [0], [0], [1], [0, 0, 1, 1], [], []>} : vector<128x128xbf16>, vector<128x128xbf16>, vector<128x128xf32> -> vector<128x128xf32>
    %c1_47 = arith.constant 1 : index
    %c0_48 = arith.constant 0 : index
    %c0_49 = arith.constant 0 : index
    %59 = vector.load %arg6[%c1_47, %c0_48, %c0_49] : memref<2x1x128xf32, #tpu.memory_space<vmem>>, vector<1x1x128xf32>
    %60 = vector.shape_cast %59 : vector<1x1x128xf32> to vector<1x128xf32>
    %61 = vector.broadcast %60 : vector<1x128xf32> to vector<128x128xf32>
    %62 = arith.addf %58, %61 : vector<128x128xf32>
    %cst_50 = arith.constant 0.000000e+00 : f32
    %63 = vector.broadcast %cst_50 : f32 to vector<128x128xf32>
    %64 = arith.maximumf %62, %63 : vector<128x128xf32>
    %65 = arith.truncf %64 : vector<128x128xf32> to vector<128x128xbf16>
    %cst_51 = arith.constant dense<0.000000e+00> : vector<128x128xf32>
    %66 = tpu.matmul %65, %2, %cst_51 {dimension_numbers = #tpu.dot_dimension_numbers<[1], [0], [0], [1], [0, 0, 1, 1], [], []>} : vector<128x128xbf16>, vector<128x128xbf16>, vector<128x128xf32> -> vector<128x128xf32>
    %67 = vector.broadcast %3 : vector<1x128xf32> to vector<128x128xf32>
    %68 = arith.addf %66, %67 : vector<128x128xf32>
    %69 = arith.truncf %68 : vector<128x128xf32> to vector<128x128xbf16>
    %c128_52 = arith.constant 128 : index
    %c0_53 = arith.constant 0 : index
    %70 = vector.load %arg9[%c128_52, %c0_53] : memref<256x128xbf16, #tpu.memory_space<vmem>>, vector<128x128xbf16>
    tpu.vector_store %arg9[%c128_52, %c0_53], %69 {strides = array<i32>} : memref<256x128xbf16, #tpu.memory_space<vmem>>, vector<128x128xbf16>,
    return
  }
  func.func @transform_0(%arg0: i32) -> (i32, i32) {
    %c0_i32 = arith.constant 0 : i32
    %c0_i32_0 = arith.constant 0 : i32
    return %arg0, %c0_i32 : i32, i32
  }
  func.func @transform_1(%arg0: i32) -> (i32, i32) {
    %c0_i32 = arith.constant 0 : i32
    %c0_i32_0 = arith.constant 0 : i32
    %c0_i32_1 = arith.constant 0 : i32
    return %c0_i32, %c0_i32_0 : i32, i32
  }
  func.func @transform_2(%arg0: i32) -> (i32, i32) {
    %c0_i32 = arith.constant 0 : i32
    %c0_i32_0 = arith.constant 0 : i32
    %c0_i32_1 = arith.constant 0 : i32
    return %c0_i32, %c0_i32_0 : i32, i32
  }
  func.func @transform_3(%arg0: i32) -> (i32, i32) {
    %c0_i32 = arith.constant 0 : i32
    %c0_i32_0 = arith.constant 0 : i32
    %c0_i32_1 = arith.constant 0 : i32
    return %c0_i32, %c0_i32_0 : i32, i32
  }
  func.func @transform_4(%arg0: i32) -> (i32, i32, i32) {
    %c0_i32 = arith.constant 0 : i32
    %c0_i32_0 = arith.constant 0 : i32
    %c0_i32_1 = arith.constant 0 : i32
    %c0_i32_2 = arith.constant 0 : i32
    return %c0_i32, %c0_i32_0, %c0_i32_1 : i32, i32, i32
  }
  func.func @transform_5(%arg0: i32) -> (i32, i32, i32) {
    %c0_i32 = arith.constant 0 : i32
    %c0_i32_0 = arith.constant 0 : i32
    %c0_i32_1 = arith.constant 0 : i32
    %c0_i32_2 = arith.constant 0 : i32
    return %c0_i32, %c0_i32_0, %c0_i32_1 : i32, i32, i32
  }
  func.func @transform_6(%arg0: i32) -> (i32, i32) {
    %c0_i32 = arith.constant 0 : i32
    %c0_i32_0 = arith.constant 0 : i32
    %c0_i32_1 = arith.constant 0 : i32
    return %c0_i32, %c0_i32_0 : i32, i32
  }
  func.func @transform_7(%arg0: i32) -> (i32, i32) {
    %c0_i32 = arith.constant 0 : i32
    %c0_i32_0 = arith.constant 0 : i32
    %c0_i32_1 = arith.constant 0 : i32
    return %c0_i32, %c0_i32_0 : i32, i32
  }
  func.func @transform_8(%arg0: i32) -> (i32, i32) {
    %c0_i32 = arith.constant 0 : i32
    %c0_i32_0 = arith.constant 0 : i32
    return %arg0, %c0_i32 : i32, i32
  }
}

</mosaic_0001>

<bundles_post_ra>
// kernel: gcn_encoder_forward.1
= control target key start
LH: loop header
LB: loop body
LE: loop exit
PB: predicated region body
PF: predicated region fallthrough
CT: control target
= control target key end

     0   :  { %s3460_s27 = smov 0   ;;  %s4069_s0 = inlined_call_operand.vmem [shape: bf16[512,128], index: 0, kind: input, shape index: {}]   ;;  %s4070_s1 = inlined_call_operand.vmem [shape: f32[128,128], index: 1, kind: input, shape index: {}]   ;;  %s4071_s2 = inlined_call_operand.vmem [shape: bf16[128,128], index: 2, kind: input, shape index: {}]   ;;  %s4072_s3 = inlined_call_operand.vmem [shape: bf16[128,128], index: 3, kind: input, shape index: {}]   ;;  %s4073_s4 = inlined_call_operand.vmem [shape: bf16[2,128,128], index: 4, kind: input, shape index: {}]   ;;  %s4074_s5 = inlined_call_operand.vmem [shape: f32[2,1,128], index: 5, kind: input, shape index: {}]   ;;  %s4075_s6 = inlined_call_operand.vmem [shape: bf16[128,128], index: 6, kind: input, shape index: {}]   ;;  %s4076_s7 = inlined_call_operand.vmem [shape: f32[1,128], index: 7, kind: input, shape index: {}]   ;;  %s4077_s8 = inlined_call_operand.vmem [shape: bf16[512,128], index: 8, kind: output, shape index: {}]  }
   0x1 LB: > { %s2463_s28 = sadd.s32 4294967295, %s3413_s27   ;;  %p2467_p0 = scmp.ge.s32.totalorder %s3413_s27, 1  ;;  %s3413_s27 = sphi %s3460_s27, %s18_s27  }
   0x2   : > { %p263_p1 = scmp.lt.s32.totalorder %s3413_s27, 3 }
   0x4   : > { %p264_p2 = pnand %p2467_p0, %p263_p1 }
   0x5   : > { %s2468_s9 = sshll.u32 (!%p264_p2), %s2463_s28, 5 }
   0x6   : > { %267 = sbr.rel (%p264_p2) target bundleno = 2352 (0x930), region = 52  ;;  %p298_p3 = scmp.lt.s32.totalorder (!%p264_p2), %s2468_s9, 63 }
   0xb   : > { %v3471_v0 = vld [vmem:[%s4072_s3 + $0x38] sm:$0xff]   ;;  %v3476_v1 = vld [vmem:[%s4072_s3 + $0x30] sm:$0xff]   ;;  %s4079_s9 = smov (!%p298_p3, %s2468_s9), 63  ;;  %v3486_v2 = vld [vmem:[%s4072_s3 + $0x28] sm:$0xff]  }
   0xc   : > { %2936 = vmatprep.subr.bf16.mxu0 %v3471_v0  ;;  %s2469_s14 = sshll.u32 %s4079_s9, 2  ;;  %v3500_v3 = vld [vmem:[%s4072_s3 + $0x20] sm:$0xff]   ;;  %v3509_v5 = vld [vmem:[%s4072_s3 + $0x18] sm:$0xff]   ;;  %v3515_v6 = vld [vmem:[%s4072_s3 + $0x10] sm:$0xff]  }
   0xd   : > { %2937 = vmatpush3.bf16.msra.mxu0 %v3471_v0  ;;  %s3494_s17 = scalar_lea.vmem %s4069_s0, %s2469_s14  ;;  %v3344_v7 = vld [vmem:[%s4073_s4 + $0x38] sm:$0xff]   ;;  %v3345_v8 = vld [vmem:[%s4073_s4 + $0x30] sm:$0xff]   ;;  %v3528_v9 = vld [vmem:[%s4072_s3 + $0x8] sm:$0xff]   ;;  %s3932_s10 = scalar_lea.vmem %s4077_s8, %s2469_s14 }
   0xe   : > { %2938 = vmatprep.subr.bf16.mxu0 %v3476_v1  ;;  %v3336_v4 = vld [vmem:[%s3494_s17] sm:$0xff]   ;;  %2968 = vmatprep.subr.bf16.mxu1 %v3344_v7  ;;  %v3346_v10 = vld [vmem:[%s4073_s4 + $0x28] sm:$0xff]   ;;  %v3348_v13 = vld [vmem:[%s4073_s4 + $0x18] sm:$0xff]  }
   0xf   : > { %2952 = vmatprep.mubr.bf16.mxu0 %v3336_v4  ;;  %2969 = vmatpush3.bf16.msra.mxu1 %v3344_v7  ;;  %v3537_v11 = vld [vmem:[%s4072_s3] sm:$0xff]   ;;  %v3337_v14 = vld [vmem:[%s3494_s17 + $0x8] sm:$0xff]   ;;  %v3338_v15 = vld [vmem:[%s3494_s17 + $0x10] sm:$0xff]  }
  0x10   : > { %2970 = vmatprep.subr.bf16.mxu1 %v3345_v8  ;;  %v3347_v12 = vld [vmem:[%s4073_s4 + $0x20] sm:$0xff]   ;;  %v3339_v16 = vld [vmem:[%s3494_s17 + $0x18] sm:$0xff]   ;;  %v3341_v18 = vld [vmem:[%s3494_s17 + $0x28] sm:$0xff]  }
  0x11   : > { %2939 = vmatpush3.bf16.msra.mxu0 %v3476_v1  ;;  %v3340_v17 = vld [vmem:[%s3494_s17 + $0x20] sm:$0xff]   ;;  %v3342_v19 = vld [vmem:[%s3494_s17 + $0x30] sm:$0xff]   ;;  %v3343_v20 = vld [vmem:[%s3494_s17 + $0x38] sm:$0xff]  }
  0x12   : > { %2940 = vmatprep.subr.bf16.mxu0 %v3486_v2  ;;  %v3349_v21 = vld [vmem:[%s4073_s4 + $0x10] sm:$0xff]   ;;  %v3350_v22 = vld [vmem:[%s4073_s4 + $0x8] sm:$0xff]   ;;  %v3351_v23 = vld [vmem:[%s4073_s4] sm:$0xff]  }
  0x13   : > { %2971 = vmatpush3.bf16.msra.mxu1 %v3345_v8  ;;  %v3569_v26 = vld [vmem:[%s4070_s1 + $0x18] sm:$0xff]  ;;  %v3574_v27 = vld [vmem:[%s4070_s1] sm:$0xff]  ;;  %v3579_v29 = vld [vmem:[%s4070_s1 + $0x8] sm:$0xff] }
  0x14   : > { %2972 = vmatprep.subr.bf16.mxu1 %v3346_v10  ;;  %v3584_v30 = vld [vmem:[%s4070_s1 + $0x10] sm:$0xff]  ;;  %v3593_v40 = vld [vmem:[%s4070_s1 + $0x38] sm:$0xff]  ;;  %v3598_v41 = vld [vmem:[%s4070_s1 + $0x20] sm:$0xff] }
  0x15   : > { %2941 = vmatpush3.bf16.msra.mxu0 %v3486_v2  ;;  %v3603_v43 = vld [vmem:[%s4070_s1 + $0x28] sm:$0xff]  ;;  %v3608_v44 = vld [vmem:[%s4070_s1 + $0x30] sm:$0xff]  ;;  %v3617_v54 = vld [vmem:[%s4070_s1 + $0x58] sm:$0xff] }
  0x16   : > { %2942 = vmatprep.subr.bf16.mxu0 %v3500_v3  ;;  %v3622_v55 = vld [vmem:[%s4070_s1 + $0x40] sm:$0xff]  ;;  %v3627_v57 = vld [vmem:[%s4070_s1 + $0x48] sm:$0xff]  ;;  %v3632_v58 = vld [vmem:[%s4070_s1 + $0x50] sm:$0xff] }
  0x17   : > { %2973 = vmatpush3.bf16.msra.mxu1 %v3346_v10 }
  0x18   : > { %2974 = vmatprep.subr.bf16.mxu1 %v3347_v12 }
  0x19   : > { %2943 = vmatpush3.bf16.msra.mxu0 %v3500_v3 }
  0x1a   : > { %2944 = vmatprep.subr.bf16.mxu0 %v3509_v5 }
  0x1b   : > { %2975 = vmatpush3.bf16.msra.mxu1 %v3347_v12  ;;  %v3641_v12 = vld [vmem:[%s4070_s1 + $0x78] sm:$0xff] }
  0x1c   : > { %2976 = vmatprep.subr.bf16.mxu1 %v3348_v13 }
  0x1d   : > { %2945 = vmatpush3.bf16.msra.mxu0 %v3509_v5 }
  0x1e   : > { %2946 = vmatprep.subr.bf16.mxu0 %v3515_v6 }
  0x1f   : > { %2977 = vmatpush3.bf16.msra.mxu1 %v3348_v13  ;;  %v3646_v13 = vld [vmem:[%s4070_s1 + $0x60] sm:$0xff] }
  0x20   : > { %2978 = vmatprep.subr.bf16.mxu1 %v3349_v21 }
  0x21   : > { %2947 = vmatpush3.bf16.msra.mxu0 %v3515_v6 }
  0x22   : > { %2948 = vmatprep.subr.bf16.mxu0 %v3528_v9 }
  0x23   : > { %2979 = vmatpush3.bf16.msra.mxu1 %v3349_v21 }
  0x24   : > { %2980 = vmatprep.subr.bf16.mxu1 %v3350_v22 }
  0x25   : > { %2949 = vmatpush3.bf16.msra.mxu0 %v3528_v9 }
  0x26   : > { %2950 = vmatprep.subr.bf16.mxu0 %v3537_v11 }
  0x27   : > { %2981 = vmatpush3.bf16.msra.mxu1 %v3350_v22 }
  0x28   : > { %2982 = vmatprep.subr.bf16.mxu1 %v3351_v23 }
  0x29   : > { %2951 = vmatpush3.bf16.msra.mxu0 %v3537_v11 }
  0x2b   : > { %2983 = vmatpush3.bf16.msra.mxu1 %v3351_v23 }
  0x2c   : > { %2953 = vmatmul.mubr.bf16.vlgmr.msra.gmra.mxu0 %v3337_v14 }
  0x2d   : > { %2956 = vmatprep.mubr.bf16.mxu0 %v3338_v15  ;;  %v3651_v15 = vld [vmem:[%s4070_s1 + $0x68] sm:$0xff] }
  0x34   : > { %2957 = vmatmul.mubr.bf16.gmra.mxu0 %v3339_v16  ;;  %v3656_v16 = vld [vmem:[%s4070_s1 + $0x70] sm:$0xff] }
  0x35   : > { %2960 = vmatprep.mubr.bf16.mxu0 %v3340_v17 }
  0x3c   : > { %2961 = vmatmul.mubr.bf16.gmra.mxu0 %v3341_v18 }
  0x3d   : > { %2964 = vmatprep.mubr.bf16.mxu0 %v3342_v19 }
  0x44   : > { %2965 = vmatmul.mubr.bf16.gmra.mxu0 %v3343_v20 }
  0xec   : > { %v2954_v24 = vpop.f32.mrf.mxu0 }
  0xed   : > { %v530_v35 = vadd.f32 %v2954_v24, %v3584_v30  ;;  %v3665_v24 = vld [vmem:[%s4071_s2] sm:$0xff]  }
  0xee   : > { %v521_v25 = vpop.f32.mrf.mxu0  ;;  %3016 = vmatprep.mubr.bf16.mxu0 %v3665_v24 }
  0xef   : > { %v522_v33 = vadd.f32 %v521_v25, %v3574_v27  ;;  %v3360_v25 = vld [vmem:[%s4073_s4 + $0x78] sm:$0xff]  }
  0xf0   : > { %v2955_v28 = vpop.f32.mrf.mxu0  ;;  %3032 = vmatprep.subr.bf16.mxu1 %v3360_v25 }
  0xf1   : > { %v533_v31 = vadd.f32 %v2955_v28, %v3569_v26  ;;  %v3361_v28 = vld [vmem:[%s4073_s4 + $0x70] sm:$0xff]  }
  0xf2   : > { %v524_v32 = vpop.f32.mrf.mxu0 }
  0xf3   : > { %v525_v34 = vadd.f32 %v524_v32, %v3579_v29  ;;  %v585_v38 = vpack.c.bf16 %v533_v31, %v530_v35  ;;  %v3362_v31 = vld [vmem:[%s4073_s4 + $0x68] sm:$0xff]   ;;  %v3363_v32 = vld [vmem:[%s4073_s4 + $0x60] sm:$0xff]  }
  0xf4   : > { %v2958_v36 = vpop.f32.mrf.mxu0 }
  0xf5   : > { %v584_v37 = vpack.c.bf16 %v525_v34, %v522_v33  ;;  %v546_v49 = vadd.f32 %v2958_v36, %v3608_v44  ;;  %v3364_v33 = vld [vmem:[%s4073_s4 + $0x58] sm:$0xff]  }
  0xf6   : > { %v537_v39 = vpop.f32.mrf.mxu0 }
  0xf7   : > { %2984 = vmatprep.mubr.bf16.mxu1 %v584_v37  ;;  %v538_v47 = vadd.f32 %v537_v39, %v3598_v41 }
  0xf8   : > { %v2959_v42 = vpop.f32.mrf.mxu0  ;;  %2985 = vmatmul.mubr.bf16.vlgmr.msra.gmra.mxu1 %v585_v38 }
  0xf9   : > { %v549_v45 = vadd.f32 %v2959_v42, %v3593_v40  ;;  %3033 = vmatpush3.bf16.msra.mxu1 %v3360_v25 }
  0xfa   : > { %v540_v46 = vpop.f32.mrf.mxu0  ;;  %3034 = vmatprep.subr.bf16.mxu1 %v3361_v28 }
  0xfb   : > { %v541_v48 = vadd.f32 %v540_v46, %v3603_v43  ;;  %v587_v52 = vpack.c.bf16 %v549_v45, %v546_v49 }
  0xfc   : > { %v2962_v50 = vpop.f32.mrf.mxu0 }
  0xfd   : > { %v586_v51 = vpack.c.bf16 %v541_v48, %v538_v47  ;;  %v562_v63 = vadd.f32 %v2962_v50, %v3632_v58  ;;  %3035 = vmatpush3.bf16.msra.mxu1 %v3361_v28 }
  0xfe   : > { %v553_v53 = vpop.f32.mrf.mxu0  ;;  %3036 = vmatprep.subr.bf16.mxu1 %v3362_v31 }
  0xff   : > { %2988 = vmatprep.mubr.bf16.mxu1 %v586_v51  ;;  %v554_v61 = vadd.f32 %v553_v53, %v3622_v55 }
 0x100   : > { %v2963_v56 = vpop.f32.mrf.mxu0  ;;  %2989 = vmatmul.mubr.bf16.gmra.mxu1 %v587_v52 }
 0x101   : > { %v565_v59 = vadd.f32 %v2963_v56, %v3617_v54  ;;  %3037 = vmatpush3.bf16.msra.mxu1 %v3362_v31  ;;  %v3738_v31 = vld [vmem:[%s4074_s5] ss:$0 sm:$0xff] }
 0x102   : > { %v556_v60 = vpop.f32.mrf.mxu0  ;;  %3038 = vmatprep.subr.bf16.mxu1 %v3363_v32 }
 0x103   : > { %v557_v62 = vadd.f32 %v556_v60, %v3627_v57  ;;  %v589_v8 = vpack.c.bf16 %v565_v59, %v562_v63 }
 0x104   : > { %v2966_v4 = vpop.f32.mrf.mxu0 }
 0x105   : > { %v588_v7 = vpack.c.bf16 %v557_v62, %v554_v61  ;;  %v578_v21 = vadd.f32 %v2966_v4, %v3656_v16  ;;  %3039 = vmatpush3.bf16.msra.mxu1 %v3363_v32 }
 0x106   : > { %v569_v10 = vpop.f32.mrf.mxu0  ;;  %3040 = vmatprep.subr.bf16.mxu1 %v3364_v33 }
 0x107   : > { %2992 = vmatprep.mubr.bf16.mxu1 %v588_v7  ;;  %v570_v19 = vadd.f32 %v569_v10, %v3646_v13  ;;  %v3691_v10 = vld [vmem:[%s4071_s2 + $0x10] sm:$0xff]  }
 0x108   : > { %v2967_v14 = vpop.f32.mrf.mxu0  ;;  %2993 = vmatmul.mubr.bf16.gmra.mxu1 %v589_v8  ;;  %v3686_v8 = vld [vmem:[%s4071_s2 + $0x8] sm:$0xff]  }
 0x109   : > { %v581_v17 = vadd.f32 %v2967_v14, %v3641_v12  ;;  %3041 = vmatpush3.bf16.msra.mxu1 %v3364_v33  ;;  %v3698_v14 = vld [vmem:[%s4071_s2 + $0x18] sm:$0xff]  }
 0x10a   : > { %v572_v18 = vpop.f32.mrf.mxu0 }
 0x10b   : > { %v573_v20 = vadd.f32 %v572_v18, %v3651_v15  ;;  %v591_v23 = vpack.c.bf16 %v581_v17, %v578_v21  ;;  %v3703_v17 = vld [vmem:[%s4071_s2 + $0x20] sm:$0xff]   ;;  %v3710_v18 = vld [vmem:[%s4071_s2 + $0x28] sm:$0xff]   ;;  %v3365_v21 = vld [vmem:[%s4073_s4 + $0x50] sm:$0xff]  }
 0x10c   : > { %3042 = vmatprep.subr.bf16.mxu1 %v3365_v21 }
 0x10d   : > { %v590_v22 = vpack.c.bf16 %v573_v20, %v570_v19  ;;  %v3715_v19 = vld [vmem:[%s4071_s2 + $0x30] sm:$0xff]   ;;  %v3722_v20 = vld [vmem:[%s4071_s2 + $0x38] sm:$0xff]   ;;  %3043 = vmatpush3.bf16.msra.mxu1 %v3365_v21 }
 0x10f   : > { %2996 = vmatprep.mubr.bf16.mxu1 %v590_v22  ;;  %v3366_v22 = vld [vmem:[%s4073_s4 + $0x48] sm:$0xff]  }
 0x110   : > { %2997 = vmatmul.mubr.bf16.gmra.mxu1 %v591_v23  ;;  %3044 = vmatprep.subr.bf16.mxu1 %v3366_v22  ;;  %v3367_v23 = vld [vmem:[%s4073_s4 + $0x40] sm:$0xff]  }
 0x111   : > { %3045 = vmatpush3.bf16.msra.mxu1 %v3366_v22 }
 0x112   : > { %3046 = vmatprep.subr.bf16.mxu1 %v3367_v23 }
 0x115   : > { %3047 = vmatpush3.bf16.msra.mxu1 %v3367_v23 }
 0x1b8   : > { %v2986_v34 = vpop.f32.mrf.mxu1 }
 0x1ba   : > { %v690_v35 = vpop.f32.mrf.mxu1 }
 0x1bc   : > { %v2987_v36 = vpop.f32.mrf.mxu1 }
 0x1bd   : > { %v754_v4 = vpack.c.bf16 %v2987_v36, %v2986_v34 }
 0x1be   : > { %v693_v37 = vpop.f32.mrf.mxu1 }
 0x1bf   : > { %v753_v7 = vpack.c.bf16 %v693_v37, %v690_v35 }
 0x1c0   : > { %v2990_v38 = vpop.f32.mrf.mxu1 }
 0x1c2   : > { %v706_v39 = vpop.f32.mrf.mxu1 }
 0x1c4   : > { %v2991_v42 = vpop.f32.mrf.mxu1 }
 0x1c5   : > { %v756_v62 = vpack.c.bf16 %v2991_v42, %v2990_v38 }
 0x1c6   : > { %v709_v45 = vpop.f32.mrf.mxu1 }
 0x1c7   : > { %v755_v63 = vpack.c.bf16 %v709_v45, %v706_v39 }
 0x1c8   : > { %v2994_v46 = vpop.f32.mrf.mxu1 }
 0x1ca   : > { %v722_v47 = vpop.f32.mrf.mxu1 }
 0x1cc   : > { %v2995_v48 = vpop.f32.mrf.mxu1 }
 0x1cd   : > { %v758_v60 = vpack.c.bf16 %v2995_v48, %v2994_v46 }
 0x1ce   : > { %v725_v49 = vpop.f32.mrf.mxu1 }
 0x1cf   : > { %v757_v61 = vpack.c.bf16 %v725_v49, %v722_v47 }
 0x1d0   : > { %v2998_v50 = vpop.f32.mrf.mxu1 }
 0x1d2   : > { %v738_v51 = vpop.f32.mrf.mxu1 }
 0x1d4   : > { %v2999_v52 = vpop.f32.mrf.mxu1 }
 0x1d5   : > { %v760_v53 = vpack.c.bf16 %v2999_v52, %v2998_v50 }
 0x1d6   : > { %v741_v56 = vpop.f32.mrf.mxu1 }
 0x1d7   : > { %v759_v59 = vpack.c.bf16 %v741_v56, %v738_v51  ;;  %3000 = vmatprep.subr.bf16.mxu0 %v760_v53 }
 0x1d8   : > { %3001 = vmatpush3.bf16.msra.mxu0 %v760_v53 }
 0x1d9   : > { %3002 = vmatprep.subr.bf16.mxu0 %v759_v59 }
 0x1dc   : > { %3003 = vmatpush3.bf16.msra.mxu0 %v759_v59 }
 0x1dd   : > { %3004 = vmatprep.subr.bf16.mxu0 %v758_v60 }
 0x1e0   : > { %3005 = vmatpush3.bf16.msra.mxu0 %v758_v60 }
 0x1e1   : > { %3006 = vmatprep.subr.bf16.mxu0 %v757_v61 }
 0x1e4   : > { %3007 = vmatpush3.bf16.msra.mxu0 %v757_v61 }
 0x1e5   : > { %3008 = vmatprep.subr.bf16.mxu0 %v756_v62 }
 0x1e8   : > { %3009 = vmatpush3.bf16.msra.mxu0 %v756_v62 }
 0x1e9   : > { %3010 = vmatprep.subr.bf16.mxu0 %v755_v63 }
 0x1ec   : > { %3011 = vmatpush3.bf16.msra.mxu0 %v755_v63 }
 0x1ed   : > { %3012 = vmatprep.subr.bf16.mxu0 %v754_v4 }
 0x1f0   : > { %3013 = vmatpush3.bf16.msra.mxu0 %v754_v4 }
 0x1f1   : > { %3014 = vmatprep.subr.bf16.mxu0 %v753_v7 }
 0x1f4   : > { %3015 = vmatpush3.bf16.msra.mxu0 %v753_v7 }
 0x1f7   : > { %3017 = vmatmul.mubr.bf16.vlgmr.msra.gmra.mxu0 %v3686_v8 }
 0x1f8   : > { %3020 = vmatprep.mubr.bf16.mxu0 %v3691_v10 }
 0x1ff   : > { %3021 = vmatmul.mubr.bf16.gmra.mxu0 %v3698_v14 }
 0x200   : > { %3024 = vmatprep.mubr.bf16.mxu0 %v3703_v17 }
 0x207   : > { %3025 = vmatmul.mubr.bf16.gmra.mxu0 %v3710_v18 }
 0x208   : > { %3028 = vmatprep.mubr.bf16.mxu0 %v3715_v19 }
 0x20f   : > { %3029 = vmatmul.mubr.bf16.gmra.mxu0 %v3722_v20 }
 0x210   : > { %3080 = vmatprep.mubr.bf16.mxu0 %v3665_v24 }
 0x2b7   : > { %v3018_v25 = vpop.f32.mrf.mxu0 }
 0x2b8   : > { %v859_v35 = vadd.f32 %v3018_v25, %v3738_v31 }
 0x2b9   : > { %v850_v28 = vpop.f32.mrf.mxu0 }
 0x2ba   : > { %v851_v33 = vadd.f32 %v3738_v31, %v850_v28  ;;  %v915_v46 = vmax.f32 %v859_v35, 0.0 }
 0x2bb   : > { %v3019_v32 = vpop.f32.mrf.mxu0 }
 0x2bc   : > { %v862_v34 = vadd.f32 %v3019_v32, %v3738_v31  ;;  %v913_v42 = vmax.f32 %v851_v33, 0.0 }
 0x2bd   : > { %v853_v36 = vpop.f32.mrf.mxu0 }
 0x2be   : > { %v854_v37 = vadd.f32 %v3738_v31, %v853_v36  ;;  %v916_v38 = vmax.f32 %v862_v34, 0.0 }
 0x2bf   : > { %v3022_v39 = vpop.f32.mrf.mxu0 }
 0x2c0   : > { %v914_v45 = vmax.f32 %v854_v37, 0.0  ;;  %v930_v49 = vpack.c.bf16 %v916_v38, %v915_v46  ;;  %v875_v53 = vadd.f32 %v3022_v39, %v3738_v31 }
 0x2c1   : > { %v866_v47 = vpop.f32.mrf.mxu0 }
 0x2c2   : > { %v929_v48 = vpack.c.bf16 %v914_v45, %v913_v42  ;;  %v867_v51 = vadd.f32 %v3738_v31, %v866_v47  ;;  %v919_v4 = vmax.f32 %v875_v53, 0.0 }
 0x2c3   : > { %v3023_v50 = vpop.f32.mrf.mxu0 }
 0x2c4   : > { %v878_v52 = vadd.f32 %v3023_v50, %v3738_v31  ;;  %3048 = vmatprep.mubr.bf16.mxu1 %v929_v48  ;;  %v917_v62 = vmax.f32 %v867_v51, 0.0 }
 0x2c5   : > { %v869_v56 = vpop.f32.mrf.mxu0  ;;  %3049 = vmatmul.mubr.bf16.vlgmr.msra.gmra.mxu1 %v930_v49 }
 0x2c6   : > { %v870_v59 = vadd.f32 %v3738_v31, %v869_v56  ;;  %v920_v60 = vmax.f32 %v878_v52, 0.0 }
 0x2c7   : > { %v3026_v61 = vpop.f32.mrf.mxu0 }
 0x2c8   : > { %v918_v63 = vmax.f32 %v870_v59, 0.0  ;;  %v932_v22 = vpack.c.bf16 %v920_v60, %v919_v4  ;;  %v891_v32 = vadd.f32 %v3026_v61, %v3738_v31  ;;  %v3764_v4 = vld [vmem:[%s4075_s6 + $0x30] sm:$0xff]  }
 0x2c9   : > { %v882_v7 = vpop.f32.mrf.mxu0 }
 0x2ca   : > { %v931_v21 = vpack.c.bf16 %v918_v63, %v917_v62  ;;  %v883_v25 = vadd.f32 %v3738_v31, %v882_v7  ;;  %v923_v39 = vmax.f32 %v891_v32, 0.0  ;;  %v3759_v63 = vld [vmem:[%s4075_s6 + $0x38] sm:$0xff]   ;;  %v3772_v7 = vld [vmem:[%s4075_s6 + $0x28] sm:$0xff]  }
 0x2cb   : > { %v3027_v23 = vpop.f32.mrf.mxu0  ;;  %3096 = vmatprep.subr.bf16.mxu1 %v3759_v63 }
 0x2cc   : > { %v894_v28 = vadd.f32 %v3027_v23, %v3738_v31  ;;  %3052 = vmatprep.mubr.bf16.mxu1 %v931_v21  ;;  %v921_v37 = vmax.f32 %v883_v25, 0.0  ;;  %3097 = vmatpush3.bf16.msra.mxu1 %v3759_v63  ;;  %v3779_v21 = vld [vmem:[%s4075_s6 + $0x20] sm:$0xff]   ;;  %v3786_v25 = vld [vmem:[%s4075_s6 + $0x18] sm:$0xff]  }
 0x2cd   : > { %v885_v33 = vpop.f32.mrf.mxu0  ;;  %3053 = vmatmul.mubr.bf16.gmra.mxu1 %v932_v22  ;;  %3098 = vmatprep.subr.bf16.mxu1 %v3764_v4 }
 0x2ce   : > { %v886_v34 = vadd.f32 %v3738_v31, %v885_v33  ;;  %v924_v35 = vmax.f32 %v894_v28, 0.0 }
 0x2cf   : > { %v3030_v36 = vpop.f32.mrf.mxu0 }
 0x2d0   : > { %v922_v38 = vmax.f32 %v886_v34, 0.0  ;;  %v934_v46 = vpack.c.bf16 %v924_v35, %v923_v39  ;;  %v907_v50 = vadd.f32 %v3030_v36, %v3738_v31  ;;  %3099 = vmatpush3.bf16.msra.mxu1 %v3764_v4 }
 0x2d1   : > { %v898_v42 = vpop.f32.mrf.mxu0  ;;  %3100 = vmatprep.subr.bf16.mxu1 %v3772_v7 }
 0x2d2   : > { %v933_v45 = vpack.c.bf16 %v922_v38, %v921_v37  ;;  %v899_v48 = vadd.f32 %v3738_v31, %v898_v42  ;;  %v927_v60 = vmax.f32 %v907_v50, 0.0 }
 0x2d3   : > { %v3031_v47 = vpop.f32.mrf.mxu0 }
 0x2d4   : > { %v910_v49 = vadd.f32 %v3031_v47, %v3738_v31  ;;  %3056 = vmatprep.mubr.bf16.mxu1 %v933_v45  ;;  %v925_v56 = vmax.f32 %v899_v48, 0.0  ;;  %3101 = vmatpush3.bf16.msra.mxu1 %v3772_v7 }
 0x2d5   : > { %v901_v51 = vpop.f32.mrf.mxu0  ;;  %3057 = vmatmul.mubr.bf16.gmra.mxu1 %v934_v46  ;;  %3102 = vmatprep.subr.bf16.mxu1 %v3779_v21 }
 0x2d6   : > { %v902_v52 = vadd.f32 %v3738_v31, %v901_v51  ;;  %v928_v53 = vmax.f32 %v910_v49, 0.0 }
 0x2d8   : > { %v926_v59 = vmax.f32 %v902_v52, 0.0  ;;  %v936_v62 = vpack.c.bf16 %v928_v53, %v927_v60  ;;  %3103 = vmatpush3.bf16.msra.mxu1 %v3779_v21 }
 0x2d9   : > { %3104 = vmatprep.subr.bf16.mxu1 %v3786_v25 }
 0x2da   : > { %v935_v61 = vpack.c.bf16 %v926_v59, %v925_v56 }
 0x2dc   : > { %3060 = vmatprep.mubr.bf16.mxu1 %v935_v61  ;;  %3105 = vmatpush3.bf16.msra.mxu1 %v3786_v25  ;;  %v3374_v61 = vld [vmem:[%s3494_s17 + $0x70] sm:$0xff]  }
 0x2dd   : > { %3061 = vmatmul.mubr.bf16.gmra.mxu1 %v936_v62  ;;  %v3375_v62 = vld [vmem:[%s3494_s17 + $0x78] sm:$0xff]  }
 0x385   : > { %v3050_v22 = vpop.f32.mrf.mxu1 }
 0x387   : > { %v1036_v23 = vpop.f32.mrf.mxu1 }
 0x389   : > { %v3051_v28 = vpop.f32.mrf.mxu1 }
 0x38a   : > { %v1100_v59 = vpack.c.bf16 %v3051_v28, %v3050_v22  ;;  %v3840_v22 = vld [vmem:[%s4075_s6] sm:$0xff]  }
 0x38b   : > { %v1039_v32 = vpop.f32.mrf.mxu1 }
 0x38c   : > { %v1099_v60 = vpack.c.bf16 %v1039_v32, %v1036_v23  ;;  %v3384_v23 = vld [vmem:[%s4073_s4 + $0x38] sm:$0xff]  }
 0x38d   : > { %v3054_v33 = vpop.f32.mrf.mxu1 }
 0x38f   : > { %v1052_v34 = vpop.f32.mrf.mxu1 }
 0x391   : > { %v3055_v35 = vpop.f32.mrf.mxu1 }
 0x392   : > { %v1102_v53 = vpack.c.bf16 %v3055_v35, %v3054_v33  ;;  %v3850_v33 = vld [vmem:[%s4074_s5 + $0x1] ss:$0 sm:$0xff] }
 0x393   : > { %v1055_v36 = vpop.f32.mrf.mxu1 }
 0x394   : > { %v1101_v56 = vpack.c.bf16 %v1055_v36, %v1052_v34 }
 0x395   : > { %v3058_v37 = vpop.f32.mrf.mxu1 }
 0x397   : > { %v1068_v38 = vpop.f32.mrf.mxu1 }
 0x399   : > { %v3059_v39 = vpop.f32.mrf.mxu1 }
 0x39a   : > { %v1104_v51 = vpack.c.bf16 %v3059_v39, %v3058_v37 }
 0x39b   : > { %v1071_v42 = vpop.f32.mrf.mxu1 }
 0x39c   : > { %v1103_v52 = vpack.c.bf16 %v1071_v42, %v1068_v38 }
 0x39d   : > { %v3062_v45 = vpop.f32.mrf.mxu1 }
 0x39f   : > { %v1084_v46 = vpop.f32.mrf.mxu1 }
 0x3a1   : > { %v3063_v47 = vpop.f32.mrf.mxu1 }
 0x3a2   : > { %v1106_v48 = vpack.c.bf16 %v3063_v47, %v3062_v45 }
 0x3a3   : > { %v1087_v49 = vpop.f32.mrf.mxu1 }
 0x3a4   : > { %v1105_v50 = vpack.c.bf16 %v1087_v49, %v1084_v46  ;;  %3064 = vmatprep.subr.bf16.mxu0 %v1106_v48 }
 0x3a5   : > { %3065 = vmatpush3.bf16.msra.mxu0 %v1106_v48 }
 0x3a6   : > { %3066 = vmatprep.subr.bf16.mxu0 %v1105_v50 }
 0x3a9   : > { %3067 = vmatpush3.bf16.msra.mxu0 %v1105_v50 }
 0x3aa   : > { %3068 = vmatprep.subr.bf16.mxu0 %v1104_v51 }
 0x3ad   : > { %3069 = vmatpush3.bf16.msra.mxu0 %v1104_v51 }
 0x3ae   : > { %3070 = vmatprep.subr.bf16.mxu0 %v1103_v52 }
 0x3b1   : > { %3071 = vmatpush3.bf16.msra.mxu0 %v1103_v52 }
 0x3b2   : > { %3072 = vmatprep.subr.bf16.mxu0 %v1102_v53 }
 0x3b5   : > { %3073 = vmatpush3.bf16.msra.mxu0 %v1102_v53  ;;  %v3385_v53 = vld [vmem:[%s4073_s4 + $0x30] sm:$0xff]  }
 0x3b6   : > { %3074 = vmatprep.subr.bf16.mxu0 %v1101_v56 }
 0x3b9   : > { %3075 = vmatpush3.bf16.msra.mxu0 %v1101_v56 }
 0x3ba   : > { %3076 = vmatprep.subr.bf16.mxu0 %v1100_v59 }
 0x3bd   : > { %3077 = vmatpush3.bf16.msra.mxu0 %v1100_v59 }
 0x3be   : > { %3078 = vmatprep.subr.bf16.mxu0 %v1099_v60 }
 0x3c1   : > { %3079 = vmatpush3.bf16.msra.mxu0 %v1099_v60 }
 0x3c2   : > { %3128 = vmatprep.subr.bf16.mxu0 %v3471_v0 }
 0x3c4   : > { %3081 = vmatmul.mubr.bf16.vlgmr.msra.gmra.mxu0 %v3686_v8 }
 0x3c5   : > { %3129 = vmatpush3.bf16.msra.mxu0 %v3471_v0  ;;  %3084 = vmatprep.mubr.bf16.mxu0 %v3691_v10  ;;  %v3368_v0 = vld [vmem:[%s3494_s17 + $0x40] sm:$0xff]  }
 0x3c6   : > { %3130 = vmatprep.subr.bf16.mxu0 %v3476_v1 }
 0x3c9   : > { %3131 = vmatpush3.bf16.msra.mxu0 %v3476_v1  ;;  %v3369_v1 = vld [vmem:[%s3494_s17 + $0x48] sm:$0xff]  }
 0x3ca   : > { %3132 = vmatprep.subr.bf16.mxu0 %v3486_v2 }
 0x3cc   : > { %3085 = vmatmul.mubr.bf16.gmra.mxu0 %v3698_v14 }
 0x3cd   : > { %3133 = vmatpush3.bf16.msra.mxu0 %v3486_v2  ;;  %3088 = vmatprep.mubr.bf16.mxu0 %v3703_v17  ;;  %v3370_v2 = vld [vmem:[%s3494_s17 + $0x50] sm:$0xff]  }
 0x3ce   : > { %3134 = vmatprep.subr.bf16.mxu0 %v3500_v3 }
 0x3d1   : > { %3135 = vmatpush3.bf16.msra.mxu0 %v3500_v3  ;;  %v3371_v3 = vld [vmem:[%s3494_s17 + $0x58] sm:$0xff]  }
 0x3d2   : > { %3136 = vmatprep.subr.bf16.mxu0 %v3509_v5 }
 0x3d4   : > { %3089 = vmatmul.mubr.bf16.gmra.mxu0 %v3710_v18 }
 0x3d5   : > { %3137 = vmatpush3.bf16.msra.mxu0 %v3509_v5  ;;  %3092 = vmatprep.mubr.bf16.mxu0 %v3715_v19  ;;  %v3372_v5 = vld [vmem:[%s3494_s17 + $0x60] sm:$0xff]  }
 0x3d6   : > { %3138 = vmatprep.subr.bf16.mxu0 %v3515_v6 }
 0x3d9   : > { %3139 = vmatpush3.bf16.msra.mxu0 %v3515_v6  ;;  %v3373_v6 = vld [vmem:[%s3494_s17 + $0x68] sm:$0xff]  }
 0x3da   : > { %3140 = vmatprep.subr.bf16.mxu0 %v3528_v9 }
 0x3dc   : > { %3093 = vmatmul.mubr.bf16.gmra.mxu0 %v3722_v20 }
 0x3dd   : > { %3141 = vmatpush3.bf16.msra.mxu0 %v3528_v9  ;;  %3144 = vmatprep.mubr.bf16.mxu0 %v3368_v0  ;;  %v3826_v9 = vld [vmem:[%s4075_s6 + $0x10] sm:$0xff]  }
 0x3de   : > { %3142 = vmatprep.subr.bf16.mxu0 %v3537_v11  ;;  %3106 = vmatprep.subr.bf16.mxu1 %v3826_v9 }
 0x3df   : > { %3107 = vmatpush3.bf16.msra.mxu1 %v3826_v9 }
 0x3e1   : > { %3143 = vmatpush3.bf16.msra.mxu0 %v3537_v11  ;;  %v3833_v11 = vld [vmem:[%s4075_s6 + $0x8] sm:$0xff]  }
 0x3e2   : > { %3108 = vmatprep.subr.bf16.mxu1 %v3833_v11 }
 0x3e3   : > { %3109 = vmatpush3.bf16.msra.mxu1 %v3833_v11 }
 0x3e4   : > { %3145 = vmatmul.mubr.bf16.vlgmr.msra.gmra.mxu0 %v3369_v1  ;;  %3110 = vmatprep.subr.bf16.mxu1 %v3840_v22 }
 0x3e5   : > { %3148 = vmatprep.mubr.bf16.mxu0 %v3370_v2 }
 0x3e7   : > { %3111 = vmatpush3.bf16.msra.mxu1 %v3840_v22 }
 0x3e8   : > { %3160 = vmatprep.subr.bf16.mxu1 %v3384_v23 }
 0x3ec   : > { %3149 = vmatmul.mubr.bf16.gmra.mxu0 %v3371_v3 }
 0x3ed   : > { %3152 = vmatprep.mubr.bf16.mxu0 %v3372_v5  ;;  %v3386_v5 = vld [vmem:[%s4073_s4 + $0x28] sm:$0xff]  }
 0x3f4   : > { %3153 = vmatmul.mubr.bf16.gmra.mxu0 %v3373_v6 }
 0x3f5   : > { %3156 = vmatprep.mubr.bf16.mxu0 %v3374_v61 }
 0x3fc   : > { %3157 = vmatmul.mubr.bf16.gmra.mxu0 %v3375_v62 }
 0x3fd   : > { %3208 = vmatprep.mubr.bf16.mxu0 %v3665_v24 }
 0x484   : > { %v3082_v28 = vpop.f32.mrf.mxu0 }
 0x485   : > { %v1158_v37 = vadd.f32 %v3082_v28, %v3850_v33 }
 0x486   : > { %v1149_v32 = vpop.f32.mrf.mxu0 }
 0x487   : > { %v1150_v35 = vadd.f32 %v3850_v33, %v1149_v32  ;;  %v1214_v48 = vmax.f32 %v1158_v37, 0.0 }
 0x488   : > { %v3083_v34 = vpop.f32.mrf.mxu0 }
 0x489   : > { %v1161_v36 = vadd.f32 %v3083_v34, %v3850_v33  ;;  %v1212_v46 = vmax.f32 %v1150_v35, 0.0 }
 0x48a   : > { %v1152_v38 = vpop.f32.mrf.mxu0 }
 0x48b   : > { %v1153_v39 = vadd.f32 %v3850_v33, %v1152_v38  ;;  %v1215_v42 = vmax.f32 %v1161_v36, 0.0 }
 0x48c   : > { %v3086_v45 = vpop.f32.mrf.mxu0 }
 0x48d   : > { %v1213_v47 = vmax.f32 %v1153_v39, 0.0  ;;  %v1229_v51 = vpack.c.bf16 %v1215_v42, %v1214_v48  ;;  %v1174_v60 = vadd.f32 %v3086_v45, %v3850_v33 }
 0x48e   : > { %v1165_v49 = vpop.f32.mrf.mxu0 }
 0x48f   : > { %v1228_v50 = vpack.c.bf16 %v1213_v47, %v1212_v46  ;;  %v1166_v56 = vadd.f32 %v3850_v33, %v1165_v49  ;;  %v1218_v62 = vmax.f32 %v1174_v60, 0.0  ;;  %v3388_v47 = vld [vmem:[%s4073_s4 + $0x18] sm:$0xff]  }
 0x490   : > { %v3087_v52 = vpop.f32.mrf.mxu0 }
 0x491   : > { %v1177_v59 = vadd.f32 %v3087_v52, %v3850_v33  ;;  %3112 = vmatprep.mubr.bf16.mxu1 %v1228_v50  ;;  %v1216_v6 = vmax.f32 %v1166_v56, 0.0 }
 0x492   : > { %v1168_v0 = vpop.f32.mrf.mxu0  ;;  %3113 = vmatmul.mubr.bf16.vlgmr.msra.gmra.mxu1 %v1229_v51 }
 0x493   : > { %v1169_v1 = vadd.f32 %v3850_v33, %v1168_v0  ;;  %3161 = vmatpush3.bf16.msra.mxu1 %v3384_v23  ;;  %v1219_v2 = vmax.f32 %v1177_v59, 0.0  ;;  %v3387_v23 = vld [vmem:[%s4073_s4 + $0x20] sm:$0xff]   ;;  %v3389_v59 = vld [vmem:[%s4073_s4 + $0x10] sm:$0xff]  }
 0x494   : > { %v3090_v3 = vpop.f32.mrf.mxu0  ;;  %3162 = vmatprep.subr.bf16.mxu1 %v3385_v53 }
 0x495   : > { %v1217_v61 = vmax.f32 %v1169_v1, 0.0  ;;  %v1231_v34 = vpack.c.bf16 %v1219_v2, %v1218_v62  ;;  %v1190_v38 = vadd.f32 %v3090_v3, %v3850_v33 }
 0x496   : > { %v1181_v28 = vpop.f32.mrf.mxu0 }
 0x497   : > { %v1230_v32 = vpack.c.bf16 %v1217_v61, %v1216_v6  ;;  %3163 = vmatpush3.bf16.msra.mxu1 %v3385_v53  ;;  %v1182_v36 = vadd.f32 %v3850_v33, %v1181_v28  ;;  %v1222_v50 = vmax.f32 %v1190_v38, 0.0  ;;  %v3390_v61 = vld [vmem:[%s4073_s4 + $0x8] sm:$0xff]  }
 0x498   : > { %v3091_v35 = vpop.f32.mrf.mxu0  ;;  %3164 = vmatprep.subr.bf16.mxu1 %v3386_v5 }
 0x499   : > { %v1193_v37 = vadd.f32 %v3091_v35, %v3850_v33  ;;  %3116 = vmatprep.mubr.bf16.mxu1 %v1230_v32  ;;  %v1220_v48 = vmax.f32 %v1182_v36, 0.0 }
 0x49a   : > { %v1184_v39 = vpop.f32.mrf.mxu0  ;;  %3117 = vmatmul.mubr.bf16.gmra.mxu1 %v1231_v34 }
 0x49b   : > { %v1185_v42 = vadd.f32 %v3850_v33, %v1184_v39  ;;  %3165 = vmatpush3.bf16.msra.mxu1 %v3386_v5  ;;  %v1223_v45 = vmax.f32 %v1193_v37, 0.0  ;;  %v3391_v37 = vld [vmem:[%s4073_s4] sm:$0xff]  }
 0x49c   : > { %v3094_v46 = vpop.f32.mrf.mxu0  ;;  %3166 = vmatprep.subr.bf16.mxu1 %v3387_v23 }
 0x49d   : > { %v1221_v49 = vmax.f32 %v1185_v42, 0.0  ;;  %v1233_v53 = vpack.c.bf16 %v1223_v45, %v1222_v50  ;;  %v1206_v1 = vadd.f32 %v3094_v46, %v3850_v33 }
 0x49e   : > { %v1197_v51 = vpop.f32.mrf.mxu0 }
 0x49f   : > { %v1232_v52 = vpack.c.bf16 %v1221_v49, %v1220_v48  ;;  %3167 = vmatpush3.bf16.msra.mxu1 %v3387_v23  ;;  %v1198_v60 = vadd.f32 %v3850_v33, %v1197_v51  ;;  %v1226_v32 = vmax.f32 %v1206_v1, 0.0 }
 0x4a0   : > { %v3095_v56 = vpop.f32.mrf.mxu0  ;;  %3168 = vmatprep.subr.bf16.mxu1 %v3388_v47 }
 0x4a1   : > { %v1209_v0 = vadd.f32 %v3095_v56, %v3850_v33  ;;  %3120 = vmatprep.mubr.bf16.mxu1 %v1232_v52  ;;  %v1224_v62 = vmax.f32 %v1198_v60, 0.0 }
 0x4a2   : > { %v1200_v2 = vpop.f32.mrf.mxu0  ;;  %3121 = vmatmul.mubr.bf16.gmra.mxu1 %v1233_v53 }
 0x4a3   : > { %v1201_v3 = vadd.f32 %v3850_v33, %v1200_v2  ;;  %3169 = vmatpush3.bf16.msra.mxu1 %v3388_v47  ;;  %v1227_v5 = vmax.f32 %v1209_v0, 0.0 }
 0x4a4   : > { %v3146_v6 = vpop.f32.mrf.mxu0  ;;  %3170 = vmatprep.subr.bf16.mxu1 %v3389_v59 }
 0x4a5   : > { %v1225_v28 = vmax.f32 %v1201_v3, 0.0  ;;  %v1235_v23 = vpack.c.bf16 %v1227_v5, %v1226_v32  ;;  %v1574_v48 = vadd.f32 %v3146_v6, %v3584_v30 }
 0x4a6   : > { %v1565_v34 = vpop.f32.mrf.mxu0 }
 0x4a7   : > { %v1234_v35 = vpack.c.bf16 %v1225_v28, %v1224_v62  ;;  %3171 = vmatpush3.bf16.msra.mxu1 %v3389_v59  ;;  %v1566_v39 = vadd.f32 %v1565_v34, %v3574_v27 }
 0x4a8   : > { %v3147_v36 = vpop.f32.mrf.mxu0  ;;  %3172 = vmatprep.subr.bf16.mxu1 %v3390_v61 }
 0x4a9   : > { %3124 = vmatprep.mubr.bf16.mxu1 %v1234_v35  ;;  %v1577_v45 = vadd.f32 %v3147_v36, %v3569_v26  ;;  %v3393_v35 = vld [vmem:[%s4073_s4 + $0x70] sm:$0xff]   ;;  %v3396_v36 = vld [vmem:[%s4073_s4 + $0x58] sm:$0xff]  }
 0x4aa   : > { %3125 = vmatmul.mubr.bf16.gmra.mxu1 %v1235_v23  ;;  %v1568_v38 = vpop.f32.mrf.mxu0 }
 0x4ab   : > { %v1569_v42 = vadd.f32 %v1568_v38, %v3579_v29  ;;  %3173 = vmatpush3.bf16.msra.mxu1 %v3390_v61  ;;  %v1629_v50 = vpack.c.bf16 %v1577_v45, %v1574_v48 }
 0x4ac   : > { %v3150_v46 = vpop.f32.mrf.mxu0  ;;  %3174 = vmatprep.subr.bf16.mxu1 %v3391_v37 }
 0x4ad   : > { %v1628_v47 = vpack.c.bf16 %v1569_v42, %v1566_v39  ;;  %v1590_v59 = vadd.f32 %v3150_v46, %v3608_v44 }
 0x4ae   : > { %v1581_v49 = vpop.f32.mrf.mxu0 }
 0x4af   : > { %3175 = vmatpush3.bf16.msra.mxu1 %v3391_v37  ;;  %3176 = vmatprep.mubr.bf16.mxu1 %v1628_v47  ;;  %v1582_v53 = vadd.f32 %v1581_v49, %v3598_v41 }
 0x4b0   : > { %v3151_v51 = vpop.f32.mrf.mxu0 }
 0x4b1   : > { %v1593_v29 = vadd.f32 %v3151_v51, %v3593_v40 }
 0x4b2   : > { %v1584_v52 = vpop.f32.mrf.mxu0  ;;  %3177 = vmatmul.mubr.bf16.vlgmr.msra.gmra.mxu1 %v1629_v50 }
 0x4b3   : > { %v1585_v27 = vadd.f32 %v1584_v52, %v3603_v43  ;;  %v1631_v30 = vpack.c.bf16 %v1593_v29, %v1590_v59 }
 0x4b4   : > { %v3154_v56 = vpop.f32.mrf.mxu0 }
 0x4b5   : > { %v1630_v26 = vpack.c.bf16 %v1585_v27, %v1582_v53  ;;  %v1606_v40 = vadd.f32 %v3154_v56, %v3632_v58  ;;  %v3392_v58 = vld [vmem:[%s4073_s4 + $0x78] sm:$0xff]  }
 0x4b6   : > { %v1597_v60 = vpop.f32.mrf.mxu0  ;;  %3224 = vmatprep.subr.bf16.mxu1 %v3392_v58 }
 0x4b7   : > { %3180 = vmatprep.mubr.bf16.mxu1 %v1630_v26  ;;  %v1598_v2 = vadd.f32 %v1597_v60, %v3622_v55  ;;  %3225 = vmatpush3.bf16.msra.mxu1 %v3392_v58 }
 0x4b8   : > { %v3155_v0 = vpop.f32.mrf.mxu0  ;;  %3226 = vmatprep.subr.bf16.mxu1 %v3393_v35 }
 0x4b9   : > { %v1609_v41 = vadd.f32 %v3155_v0, %v3617_v54 }
 0x4ba   : > { %v1600_v1 = vpop.f32.mrf.mxu0  ;;  %3181 = vmatmul.mubr.bf16.gmra.mxu1 %v1631_v30 }
 0x4bb   : > { %v1601_v3 = vadd.f32 %v1600_v1, %v3627_v57  ;;  %v1633_v61 = vpack.c.bf16 %v1609_v41, %v1606_v40  ;;  %3227 = vmatpush3.bf16.msra.mxu1 %v3393_v35 }
 0x4bc   : > { %v3158_v5 = vpop.f32.mrf.mxu0 }
 0x4bd   : > { %v1632_v43 = vpack.c.bf16 %v1601_v3, %v1598_v2  ;;  %v1622_v57 = vadd.f32 %v3158_v5, %v3656_v16  ;;  %v3920_v16 = vld [vmem:[%s4076_s7] ss:$0 sm:$0xff] }
 0x4be   : > { %v1613_v6 = vpop.f32.mrf.mxu0 }
 0x4bf   : > { %3184 = vmatprep.mubr.bf16.mxu1 %v1632_v43  ;;  %v1614_v28 = vadd.f32 %v1613_v6, %v3646_v13  ;;  %v3395_v13 = vld [vmem:[%s4073_s4 + $0x60] sm:$0xff]  }
 0x4c0   : > { %v3159_v44 = vpop.f32.mrf.mxu0 }
 0x4c1   : > { %v1625_v55 = vadd.f32 %v3159_v44, %v3641_v12  ;;  %v3394_v12 = vld [vmem:[%s4073_s4 + $0x68] sm:$0xff]  }
 0x4c2   : > { %v1616_v62 = vpop.f32.mrf.mxu0  ;;  %3185 = vmatmul.mubr.bf16.gmra.mxu1 %v1633_v61  ;;  %3228 = vmatprep.subr.bf16.mxu1 %v3394_v12 }
 0x4c3   : > { %v1617_v32 = vadd.f32 %v1616_v62, %v3651_v15  ;;  %v1635_v54 = vpack.c.bf16 %v1625_v55, %v1622_v57  ;;  %3229 = vmatpush3.bf16.msra.mxu1 %v3394_v12 }
 0x4c4   : > { %3230 = vmatprep.subr.bf16.mxu1 %v3395_v13 }
 0x4c5   : > { %v1634_v34 = vpack.c.bf16 %v1617_v32, %v1614_v28 }
 0x4c7   : > { %3188 = vmatprep.mubr.bf16.mxu1 %v1634_v34  ;;  %3231 = vmatpush3.bf16.msra.mxu1 %v3395_v13 }
 0x4c8   : > { %3232 = vmatprep.subr.bf16.mxu1 %v3396_v36 }
 0x4ca   : > { %3189 = vmatmul.mubr.bf16.gmra.mxu1 %v1635_v54 }
 0x4cb   : > { %3233 = vmatpush3.bf16.msra.mxu1 %v3396_v36 }
 0x552   : > { %v3114_v15 = vpop.f32.mrf.mxu1 }
 0x553   : > { %v1333_v38 = vadd.f32 %v3114_v15, %v3920_v16 }
 0x554   : > { %v1324_v23 = vpop.f32.mrf.mxu1 }
 0x555   : > { %v1325_v45 = vadd.f32 %v3920_v16, %v1324_v23 }
 0x556   : > { %v3115_v37 = vpop.f32.mrf.mxu1 }
 0x557   : > { %v1336_v39 = vadd.f32 %v3115_v37, %v3920_v16 }
 0x558   : > { %v1327_v42 = vpop.f32.mrf.mxu1 }
 0x559   : > { %v2657_v46 = vpack.c.bf16 %v1336_v39, %v1333_v38  ;;  %v1328_v47 = vadd.f32 %v3920_v16, %v1327_v42 }
 0x55a   : > { %v3118_v48 = vpop.f32.mrf.mxu1 }
 0x55b   : > { %2729 = vst [vmem:[%s3932_s10 + $0x8] sm:$0xff] %v2657_v46   ;;  %v2652_v49 = vpack.c.bf16 %v1328_v47, %v1325_v45  ;;  %v1349_v52 = vadd.f32 %v3118_v48, %v3920_v16 }
 0x55c   : > { %v1340_v50 = vpop.f32.mrf.mxu1 }
 0x55d   : > { %2653 = vst [vmem:[%s3932_s10] sm:$0xff] %v2652_v49   ;;  %v1341_v29 = vadd.f32 %v3920_v16, %v1340_v50 }
 0x55e   : > { %v3119_v51 = vpop.f32.mrf.mxu1 }
 0x55f   : > { %v1352_v53 = vadd.f32 %v3119_v51, %v3920_v16 }
 0x560   : > { %v1343_v27 = vpop.f32.mrf.mxu1 }
 0x561   : > { %v2667_v56 = vpack.c.bf16 %v1352_v53, %v1349_v52  ;;  %v1344_v26 = vadd.f32 %v3920_v16, %v1343_v27 }
 0x562   : > { %v3122_v59 = vpop.f32.mrf.mxu1 }
 0x563   : > { %2731 = vst [vmem:[%s3932_s10 + $0x18] sm:$0xff] %v2667_v56   ;;  %v2662_v60 = vpack.c.bf16 %v1344_v26, %v1341_v29  ;;  %v1365_v1 = vadd.f32 %v3122_v59, %v3920_v16  ;;  %v3397_v59 = vld [vmem:[%s4073_s4 + $0x50] sm:$0xff]  }
 0x564   : > { %v1356_v30 = vpop.f32.mrf.mxu1  ;;  %3234 = vmatprep.subr.bf16.mxu1 %v3397_v59 }
 0x565   : > { %2730 = vst [vmem:[%s3932_s10 + $0x10] sm:$0xff] %v2662_v60   ;;  %v1357_v41 = vadd.f32 %v3920_v16, %v1356_v30  ;;  %3235 = vmatpush3.bf16.msra.mxu1 %v3397_v59 }
 0x566   : > { %v3123_v0 = vpop.f32.mrf.mxu1 }
 0x567   : > { %v1368_v2 = vadd.f32 %v3123_v0, %v3920_v16 }
 0x568   : > { %v1359_v3 = vpop.f32.mrf.mxu1 }
 0x569   : > { %v2677_v5 = vpack.c.bf16 %v1368_v2, %v1365_v1  ;;  %v1360_v43 = vadd.f32 %v3920_v16, %v1359_v3 }
 0x56a   : > { %v3126_v40 = vpop.f32.mrf.mxu1 }
 0x56b   : > { %2733 = vst [vmem:[%s3932_s10 + $0x28] sm:$0xff] %v2677_v5   ;;  %v2672_v6 = vpack.c.bf16 %v1360_v43, %v1357_v41  ;;  %v1381_v62 = vadd.f32 %v3126_v40, %v3920_v16 }
 0x56c   : > { %v1372_v61 = vpop.f32.mrf.mxu1 }
 0x56d   : > { %2732 = vst [vmem:[%s3932_s10 + $0x20] sm:$0xff] %v2672_v6   ;;  %v1373_v55 = vadd.f32 %v3920_v16, %v1372_v61 }
 0x56e   : > { %v3127_v44 = vpop.f32.mrf.mxu1 }
 0x56f   : > { %v1384_v28 = vadd.f32 %v3127_v44, %v3920_v16 }
 0x570   : > { %v1375_v32 = vpop.f32.mrf.mxu1 }
 0x571   : > { %v2687_v34 = vpack.c.bf16 %v1384_v28, %v1381_v62  ;;  %v1376_v57 = vadd.f32 %v3920_v16, %v1375_v32 }
 0x572   : > { %v3178_v54 = vpop.f32.mrf.mxu1 }
 0x573   : > { %2735 = vst [vmem:[%s3932_s10 + $0x38] sm:$0xff] %v2687_v34   ;;  %v2682_v58 = vpack.c.bf16 %v1376_v57, %v1373_v55 }
 0x574   : > { %v1734_v35 = vpop.f32.mrf.mxu1 }
 0x575   : > { %2734 = vst [vmem:[%s3932_s10 + $0x30] sm:$0xff] %v2682_v58  }
 0x576   : > { %v3179_v12 = vpop.f32.mrf.mxu1 }
 0x577   : > { %v1798_v56 = vpack.c.bf16 %v3179_v12, %v3178_v54 }
 0x578   : > { %v1737_v13 = vpop.f32.mrf.mxu1 }
 0x579   : > { %v1797_v26 = vpack.c.bf16 %v1737_v13, %v1734_v35 }
 0x57a   : > { %v3182_v15 = vpop.f32.mrf.mxu1 }
 0x57c   : > { %v1750_v23 = vpop.f32.mrf.mxu1 }
 0x57e   : > { %v3183_v36 = vpop.f32.mrf.mxu1 }
 0x57f   : > { %v1800_v27 = vpack.c.bf16 %v3183_v36, %v3182_v15 }
 0x580   : > { %v1753_v37 = vpop.f32.mrf.mxu1 }
 0x581   : > { %v1799_v29 = vpack.c.bf16 %v1753_v37, %v1750_v23 }
 0x582   : > { %v3186_v38 = vpop.f32.mrf.mxu1 }
 0x584   : > { %v1766_v39 = vpop.f32.mrf.mxu1 }
 0x586   : > { %v3187_v42 = vpop.f32.mrf.mxu1 }
 0x587   : > { %v1802_v52 = vpack.c.bf16 %v3187_v42, %v3186_v38 }
 0x588   : > { %v1769_v45 = vpop.f32.mrf.mxu1 }
 0x589   : > { %v1801_v53 = vpack.c.bf16 %v1769_v45, %v1766_v39 }
 0x58a   : > { %v3190_v46 = vpop.f32.mrf.mxu1 }
 0x58c   : > { %v1782_v47 = vpop.f32.mrf.mxu1 }
 0x58e   : > { %v3191_v48 = vpop.f32.mrf.mxu1 }
 0x58f   : > { %v1804_v49 = vpack.c.bf16 %v3191_v48, %v3190_v46 }
 0x590   : > { %v1785_v50 = vpop.f32.mrf.mxu1 }
 0x591   : > { %v1803_v51 = vpack.c.bf16 %v1785_v50, %v1782_v47  ;;  %3192 = vmatprep.subr.bf16.mxu0 %v1804_v49 }
 0x592   : > { %3193 = vmatpush3.bf16.msra.mxu0 %v1804_v49 }
 0x593   : > { %3194 = vmatprep.subr.bf16.mxu0 %v1803_v51 }
 0x596   : > { %3195 = vmatpush3.bf16.msra.mxu0 %v1803_v51 }
 0x597   : > { %3196 = vmatprep.subr.bf16.mxu0 %v1802_v52 }
 0x59a   : > { %3197 = vmatpush3.bf16.msra.mxu0 %v1802_v52 }
 0x59b   : > { %3198 = vmatprep.subr.bf16.mxu0 %v1801_v53 }
 0x59e   : > { %3199 = vmatpush3.bf16.msra.mxu0 %v1801_v53 }
 0x59f   : > { %3200 = vmatprep.subr.bf16.mxu0 %v1800_v27 }
 0x5a2   : > { %3201 = vmatpush3.bf16.msra.mxu0 %v1800_v27 }
 0x5a3   : > { %3202 = vmatprep.subr.bf16.mxu0 %v1799_v29 }
 0x5a6   : > { %3203 = vmatpush3.bf16.msra.mxu0 %v1799_v29 }
 0x5a7   : > { %3204 = vmatprep.subr.bf16.mxu0 %v1798_v56 }
 0x5aa   : > { %3205 = vmatpush3.bf16.msra.mxu0 %v1798_v56 }
 0x5ab   : > { %3206 = vmatprep.subr.bf16.mxu0 %v1797_v26 }
 0x5ae   : > { %3207 = vmatpush3.bf16.msra.mxu0 %v1797_v26 }
 0x5b1   : > { %3209 = vmatmul.mubr.bf16.vlgmr.msra.gmra.mxu0 %v3686_v8  ;;  %v3398_v8 = vld [vmem:[%s4073_s4 + $0x48] sm:$0xff]  }
 0x5b2   : > { %3212 = vmatprep.mubr.bf16.mxu0 %v3691_v10  ;;  %3236 = vmatprep.subr.bf16.mxu1 %v3398_v8  ;;  %v3399_v10 = vld [vmem:[%s4073_s4 + $0x40] sm:$0xff]  }
 0x5b3   : > { %3237 = vmatpush3.bf16.msra.mxu1 %v3398_v8 }
 0x5b4   : > { %3238 = vmatprep.subr.bf16.mxu1 %v3399_v10 }
 0x5b7   : > { %3239 = vmatpush3.bf16.msra.mxu1 %v3399_v10 }
 0x5b8   : > { %3288 = vmatprep.subr.bf16.mxu1 %v3759_v63 }
 0x5b9   : > { %3213 = vmatmul.mubr.bf16.gmra.mxu0 %v3698_v14 }
 0x5ba   : > { %3216 = vmatprep.mubr.bf16.mxu0 %v3703_v17 }
 0x5c1   : > { %3217 = vmatmul.mubr.bf16.gmra.mxu0 %v3710_v18 }
 0x5c2   : > { %3220 = vmatprep.mubr.bf16.mxu0 %v3715_v19 }
 0x5c9   : > { %3221 = vmatmul.mubr.bf16.gmra.mxu0 %v3722_v20 }
 0x5ca   : > { %3272 = vmatprep.mubr.bf16.mxu0 %v3665_v24 }
 0x671   : > { %v3210_v24 = vpop.f32.mrf.mxu0 }
 0x672   : > { %v1855_v20 = vadd.f32 %v3210_v24, %v3738_v31 }
 0x673   : > { %v1846_v14 = vpop.f32.mrf.mxu0 }
 0x674   : > { %v1847_v18 = vadd.f32 %v3738_v31, %v1846_v14  ;;  %v1911_v41 = vmax.f32 %v1855_v20, 0.0 }
 0x675   : > { %v3211_v17 = vpop.f32.mrf.mxu0 }
 0x676   : > { %v1858_v19 = vadd.f32 %v3211_v17, %v3738_v31  ;;  %v1909_v2 = vmax.f32 %v1847_v18, 0.0 }
 0x677   : > { %v1849_v60 = vpop.f32.mrf.mxu0 }
 0x678   : > { %v1850_v30 = vadd.f32 %v3738_v31, %v1849_v60  ;;  %v1912_v0 = vmax.f32 %v1858_v19, 0.0 }
 0x679   : > { %v3214_v1 = vpop.f32.mrf.mxu0 }
 0x67a   : > { %v1910_v3 = vmax.f32 %v1850_v30, 0.0  ;;  %v1926_v40 = vpack.c.bf16 %v1912_v0, %v1911_v41  ;;  %v1871_v62 = vadd.f32 %v3214_v1, %v3738_v31 }
 0x67b   : > { %v1862_v5 = vpop.f32.mrf.mxu0 }
 0x67c   : > { %v1925_v43 = vpack.c.bf16 %v1910_v3, %v1909_v2  ;;  %v1863_v61 = vadd.f32 %v3738_v31, %v1862_v5  ;;  %v1915_v58 = vmax.f32 %v1871_v62, 0.0  ;;  %v3401_v62 = vld [vmem:[%s4071_s2 + $0x10] sm:$0xff]  }
 0x67d   : > { %v3215_v6 = vpop.f32.mrf.mxu0 }
 0x67e   : > { %v1874_v44 = vadd.f32 %v3215_v6, %v3738_v31  ;;  %3240 = vmatprep.mubr.bf16.mxu1 %v1925_v43  ;;  %v1913_v57 = vmax.f32 %v1863_v61, 0.0 }
 0x67f   : > { %v1865_v28 = vpop.f32.mrf.mxu0  ;;  %3241 = vmatmul.mubr.bf16.vlgmr.msra.gmra.mxu1 %v1926_v40 }
 0x680   : > { %v1866_v32 = vadd.f32 %v3738_v31, %v1865_v28  ;;  %3289 = vmatpush3.bf16.msra.mxu1 %v3759_v63  ;;  %v1916_v55 = vmax.f32 %v1874_v44, 0.0  ;;  %v3400_v44 = vld [vmem:[%s4071_s2 + $0x8] sm:$0xff]   ;;  %v3402_v28 = vld [vmem:[%s4071_s2 + $0x18] sm:$0xff]  }
 0x681   : > { %v3218_v34 = vpop.f32.mrf.mxu0  ;;  %3290 = vmatprep.subr.bf16.mxu1 %v3764_v4 }
 0x682   : > { %v1914_v54 = vmax.f32 %v1866_v32, 0.0  ;;  %v1928_v13 = vpack.c.bf16 %v1916_v55, %v1915_v58  ;;  %v1887_v63 = vadd.f32 %v3218_v34, %v3738_v31  ;;  %v3403_v32 = vld [vmem:[%s4071_s2 + $0x20] sm:$0xff]   ;;  %v3404_v55 = vld [vmem:[%s4071_s2 + $0x28] sm:$0xff]   ;;  %v3405_v34 = vld [vmem:[%s4071_s2 + $0x30] sm:$0xff]  }
 0x683   : > { %v1878_v35 = vpop.f32.mrf.mxu0 }
 0x684   : > { %v1927_v12 = vpack.c.bf16 %v1914_v54, %v1913_v57  ;;  %3291 = vmatpush3.bf16.msra.mxu1 %v3764_v4  ;;  %v1879_v23 = vadd.f32 %v3738_v31, %v1878_v35  ;;  %v1919_v46 = vmax.f32 %v1887_v63, 0.0  ;;  %v3406_v57 = vld [vmem:[%s4071_s2 + $0x38] sm:$0xff]  }
 0x685   : > { %v3219_v15 = vpop.f32.mrf.mxu0  ;;  %3292 = vmatprep.subr.bf16.mxu1 %v3772_v7 }
 0x686   : > { %v1890_v36 = vadd.f32 %v3219_v15, %v3738_v31  ;;  %3244 = vmatprep.mubr.bf16.mxu1 %v1927_v12  ;;  %v1917_v4 = vmax.f32 %v1879_v23, 0.0 }
 0x687   : > { %v1881_v37 = vpop.f32.mrf.mxu0  ;;  %3245 = vmatmul.mubr.bf16.gmra.mxu1 %v1928_v13 }
 0x688   : > { %v1882_v38 = vadd.f32 %v3738_v31, %v1881_v37  ;;  %3293 = vmatpush3.bf16.msra.mxu1 %v3772_v7  ;;  %v1920_v39 = vmax.f32 %v1890_v36, 0.0 }
 0x689   : > { %v3222_v42 = vpop.f32.mrf.mxu0  ;;  %3294 = vmatprep.subr.bf16.mxu1 %v3779_v21 }
 0x68a   : > { %v1918_v45 = vmax.f32 %v1882_v38, 0.0  ;;  %v1930_v49 = vpack.c.bf16 %v1920_v39, %v1919_v46  ;;  %v1903_v7 = vadd.f32 %v3222_v42, %v3738_v31 }
 0x68b   : > { %v1894_v47 = vpop.f32.mrf.mxu0 }
 0x68c   : > { %v1929_v48 = vpack.c.bf16 %v1918_v45, %v1917_v4  ;;  %3295 = vmatpush3.bf16.msra.mxu1 %v3779_v21  ;;  %v1895_v51 = vadd.f32 %v3738_v31, %v1894_v47  ;;  %v1923_v26 = vmax.f32 %v1903_v7, 0.0 }
 0x68d   : > { %v3223_v50 = vpop.f32.mrf.mxu0  ;;  %3296 = vmatprep.subr.bf16.mxu1 %v3786_v25 }
 0x68e   : > { %v1906_v52 = vadd.f32 %v3223_v50, %v3738_v31  ;;  %3248 = vmatprep.mubr.bf16.mxu1 %v1929_v48  ;;  %v1921_v21 = vmax.f32 %v1895_v51, 0.0 }
 0x68f   : > { %v1897_v53 = vpop.f32.mrf.mxu0  ;;  %3249 = vmatmul.mubr.bf16.gmra.mxu1 %v1930_v49 }
 0x690   : > { %v1898_v27 = vadd.f32 %v3738_v31, %v1897_v53  ;;  %3297 = vmatpush3.bf16.msra.mxu1 %v3786_v25  ;;  %v1924_v29 = vmax.f32 %v1906_v52, 0.0 }
 0x691   : > { %3298 = vmatprep.subr.bf16.mxu1 %v3826_v9 }
 0x692   : > { %v1922_v56 = vmax.f32 %v1898_v27, 0.0  ;;  %v1932_v8 = vpack.c.bf16 %v1924_v29, %v1923_v26 }
 0x694   : > { %v1931_v59 = vpack.c.bf16 %v1922_v56, %v1921_v21  ;;  %3299 = vmatpush3.bf16.msra.mxu1 %v3826_v9 }
 0x695   : > { %3300 = vmatprep.subr.bf16.mxu1 %v3833_v11 }
 0x696   : > { %3252 = vmatprep.mubr.bf16.mxu1 %v1931_v59 }
 0x697   : > { %3253 = vmatmul.mubr.bf16.gmra.mxu1 %v1932_v8 }
 0x698   : > { %3301 = vmatpush3.bf16.msra.mxu1 %v3833_v11 }
 0x699   : > { %3302 = vmatprep.subr.bf16.mxu1 %v3840_v22 }
 0x69c   : > { %3303 = vmatpush3.bf16.msra.mxu1 %v3840_v22 }
 0x73f   : > { %v3242_v31 = vpop.f32.mrf.mxu1 }
 0x741   : > { %v2031_v25 = vpop.f32.mrf.mxu1 }
 0x743   : > { %v3243_v10 = vpop.f32.mrf.mxu1 }
 0x744   : > { %v2095_v6 = vpack.c.bf16 %v3243_v10, %v3242_v31 }
 0x745   : > { %v2034_v24 = vpop.f32.mrf.mxu1 }
 0x746   : > { %v2094_v61 = vpack.c.bf16 %v2034_v24, %v2031_v25 }
 0x747   : > { %v3246_v14 = vpop.f32.mrf.mxu1 }
 0x749   : > { %v2047_v17 = vpop.f32.mrf.mxu1 }
 0x74b   : > { %v3247_v18 = vpop.f32.mrf.mxu1 }
 0x74c   : > { %v2097_v43 = vpack.c.bf16 %v3247_v18, %v3246_v14 }
 0x74d   : > { %v2050_v19 = vpop.f32.mrf.mxu1 }
 0x74e   : > { %v2096_v40 = vpack.c.bf16 %v2050_v19, %v2047_v17 }
 0x74f   : > { %v3250_v9 = vpop.f32.mrf.mxu1 }
 0x751   : > { %v2063_v20 = vpop.f32.mrf.mxu1 }
 0x753   : > { %v3251_v60 = vpop.f32.mrf.mxu1 }
 0x754   : > { %v2099_v22 = vpack.c.bf16 %v3251_v60, %v3250_v9 }
 0x755   : > { %v2066_v30 = vpop.f32.mrf.mxu1 }
 0x756   : > { %v2098_v5 = vpack.c.bf16 %v2066_v30, %v2063_v20 }
 0x757   : > { %v3254_v0 = vpop.f32.mrf.mxu1 }
 0x759   : > { %v2079_v1 = vpop.f32.mrf.mxu1 }
 0x75b   : > { %v3255_v2 = vpop.f32.mrf.mxu1 }
 0x75c   : > { %v2101_v11 = vpack.c.bf16 %v3255_v2, %v3254_v0 }
 0x75d   : > { %v2082_v3 = vpop.f32.mrf.mxu1 }
 0x75e   : > { %v2100_v41 = vpack.c.bf16 %v2082_v3, %v2079_v1  ;;  %3256 = vmatprep.subr.bf16.mxu0 %v2101_v11 }
 0x75f   : > { %3257 = vmatpush3.bf16.msra.mxu0 %v2101_v11 }
 0x760   : > { %3258 = vmatprep.subr.bf16.mxu0 %v2100_v41 }
 0x763   : > { %3259 = vmatpush3.bf16.msra.mxu0 %v2100_v41 }
 0x764   : > { %3260 = vmatprep.subr.bf16.mxu0 %v2099_v22 }
 0x767   : > { %3261 = vmatpush3.bf16.msra.mxu0 %v2099_v22 }
 0x768   : > { %3262 = vmatprep.subr.bf16.mxu0 %v2098_v5 }
 0x76b   : > { %3263 = vmatpush3.bf16.msra.mxu0 %v2098_v5 }
 0x76c   : > { %3264 = vmatprep.subr.bf16.mxu0 %v2097_v43 }
 0x76f   : > { %3265 = vmatpush3.bf16.msra.mxu0 %v2097_v43 }
 0x770   : > { %3266 = vmatprep.subr.bf16.mxu0 %v2096_v40 }
 0x773   : > { %3267 = vmatpush3.bf16.msra.mxu0 %v2096_v40 }
 0x774   : > { %3268 = vmatprep.subr.bf16.mxu0 %v2095_v6 }
 0x777   : > { %3269 = vmatpush3.bf16.msra.mxu0 %v2095_v6 }
 0x778   : > { %3270 = vmatprep.subr.bf16.mxu0 %v2094_v61 }
 0x77b   : > { %3271 = vmatpush3.bf16.msra.mxu0 %v2094_v61 }
 0x77e   : > { %3273 = vmatmul.mubr.bf16.vlgmr.msra.gmra.mxu0 %v3400_v44 }
 0x77f   : > { %3276 = vmatprep.mubr.bf16.mxu0 %v3401_v62 }
 0x786   : > { %3277 = vmatmul.mubr.bf16.gmra.mxu0 %v3402_v28 }
 0x787   : > { %3280 = vmatprep.mubr.bf16.mxu0 %v3403_v32 }
 0x78e   : > { %3281 = vmatmul.mubr.bf16.gmra.mxu0 %v3404_v55 }
 0x78f   : > { %3284 = vmatprep.mubr.bf16.mxu0 %v3405_v34 }
 0x796   : > { %3285 = vmatmul.mubr.bf16.gmra.mxu0 %v3406_v57 }
 0x83e   : > { %v3274_v54 = vpop.f32.mrf.mxu0 }
 0x83f   : > { %v2152_v15 = vadd.f32 %v3274_v54, %v3850_v33 }
 0x840   : > { %v2143_v58 = vpop.f32.mrf.mxu0 }
 0x841   : > { %v2144_v12 = vadd.f32 %v3850_v33, %v2143_v58  ;;  %v2208_v42 = vmax.f32 %v2152_v15, 0.0 }
 0x842   : > { %v3275_v35 = vpop.f32.mrf.mxu0 }
 0x843   : > { %v2155_v13 = vadd.f32 %v3275_v35, %v3850_v33  ;;  %v2206_v38 = vmax.f32 %v2144_v12, 0.0 }
 0x844   : > { %v2146_v23 = vpop.f32.mrf.mxu0 }
 0x845   : > { %v2147_v36 = vadd.f32 %v3850_v33, %v2146_v23  ;;  %v2209_v63 = vmax.f32 %v2155_v13, 0.0 }
 0x846   : > { %v3278_v37 = vpop.f32.mrf.mxu0 }
 0x847   : > { %v2207_v39 = vmax.f32 %v2147_v36, 0.0  ;;  %v2223_v46 = vpack.c.bf16 %v2209_v63, %v2208_v42  ;;  %v2168_v50 = vadd.f32 %v3278_v37, %v3850_v33 }
 0x848   : > { %v2159_v4 = vpop.f32.mrf.mxu0 }
 0x849   : > { %v2222_v45 = vpack.c.bf16 %v2207_v39, %v2206_v38  ;;  %v2160_v48 = vadd.f32 %v3850_v33, %v2159_v4  ;;  %v2212_v21 = vmax.f32 %v2168_v50, 0.0 }
 0x84a   : > { %v3279_v47 = vpop.f32.mrf.mxu0 }
 0x84b   : > { %v2171_v49 = vadd.f32 %v3279_v47, %v3850_v33  ;;  %3304 = vmatprep.mubr.bf16.mxu1 %v2222_v45  ;;  %v2210_v27 = vmax.f32 %v2160_v48, 0.0 }
 0x84c   : > { %v2162_v51 = vpop.f32.mrf.mxu0  ;;  %3305 = vmatmul.mubr.bf16.vlgmr.msra.gmra.mxu1 %v2223_v46 }
 0x84d   : > { %v2163_v52 = vadd.f32 %v3850_v33, %v2162_v51  ;;  %v2213_v7 = vmax.f32 %v2171_v49, 0.0 }
 0x84e   : > { %v3282_v53 = vpop.f32.mrf.mxu0 }
 0x84f   : > { %v2211_v29 = vmax.f32 %v2163_v52, 0.0  ;;  %v2225_v59 = vpack.c.bf16 %v2213_v7, %v2212_v21  ;;  %v2184_v10 = vadd.f32 %v3282_v53, %v3850_v33 }
 0x850   : > { %v2175_v56 = vpop.f32.mrf.mxu0 }
 0x851   : > { %v2224_v26 = vpack.c.bf16 %v2211_v29, %v2210_v27  ;;  %v2176_v31 = vadd.f32 %v3850_v33, %v2175_v56  ;;  %v2216_v20 = vmax.f32 %v2184_v10, 0.0 }
 0x852   : > { %v3283_v8 = vpop.f32.mrf.mxu0 }
 0x853   : > { %v2187_v25 = vadd.f32 %v3283_v8, %v3850_v33  ;;  %3308 = vmatprep.mubr.bf16.mxu1 %v2224_v26  ;;  %v2214_v19 = vmax.f32 %v2176_v31, 0.0 }
 0x854   : > { %v2178_v24 = vpop.f32.mrf.mxu0  ;;  %3309 = vmatmul.mubr.bf16.gmra.mxu1 %v2225_v59 }
 0x855   : > { %v2179_v14 = vadd.f32 %v3850_v33, %v2178_v24  ;;  %v2217_v17 = vmax.f32 %v2187_v25, 0.0 }
 0x856   : > { %v3286_v18 = vpop.f32.mrf.mxu0 }
 0x857   : > { %v2215_v9 = vmax.f32 %v2179_v14, 0.0  ;;  %v2227_v0 = vpack.c.bf16 %v2217_v17, %v2216_v20  ;;  %v2200_v3 = vadd.f32 %v3286_v18, %v3850_v33 }
 0x858   : > { %v2191_v60 = vpop.f32.mrf.mxu0 }
 0x859   : > { %v2226_v30 = vpack.c.bf16 %v2215_v9, %v2214_v19  ;;  %v2192_v2 = vadd.f32 %v3850_v33, %v2191_v60  ;;  %v2220_v6 = vmax.f32 %v2200_v3, 0.0 }
 0x85a   : > { %v3287_v1 = vpop.f32.mrf.mxu0 }
 0x85b   : > { %v2203_v11 = vadd.f32 %v3287_v1, %v3850_v33  ;;  %3312 = vmatprep.mubr.bf16.mxu1 %v2226_v30  ;;  %v2218_v43 = vmax.f32 %v2192_v2, 0.0 }
 0x85c   : > { %v2194_v41 = vpop.f32.mrf.mxu0  ;;  %3313 = vmatmul.mubr.bf16.gmra.mxu1 %v2227_v0 }
 0x85d   : > { %v2195_v22 = vadd.f32 %v3850_v33, %v2194_v41  ;;  %v2221_v5 = vmax.f32 %v2203_v11, 0.0 }
 0x85f   : > { %v2219_v40 = vmax.f32 %v2195_v22, 0.0  ;;  %v2229_v44 = vpack.c.bf16 %v2221_v5, %v2220_v6 }
 0x861   : > { %v2228_v61 = vpack.c.bf16 %v2219_v40, %v2218_v43 }
 0x863   : > { %3316 = vmatprep.mubr.bf16.mxu1 %v2228_v61 }
 0x864   : > { %3317 = vmatmul.mubr.bf16.gmra.mxu1 %v2229_v44 }
 0x90c   : > { %v3306_v62 = vpop.f32.mrf.mxu1 }
 0x90d   : > { %v2273_v55 = vadd.f32 %v3306_v62, %v3920_v16 }
 0x90e   : > { %v2264_v28 = vpop.f32.mrf.mxu1 }
 0x90f   : > { %v2265_v33 = vadd.f32 %v3920_v16, %v2264_v28 }
 0x910   : > { %v3307_v32 = vpop.f32.mrf.mxu1 }
 0x911   : > { %v2276_v34 = vadd.f32 %v3307_v32, %v3920_v16 }
 0x912   : > { %v2267_v57 = vpop.f32.mrf.mxu1 }
 0x913   : > { %v2697_v54 = vpack.c.bf16 %v2276_v34, %v2273_v55  ;;  %v2268_v58 = vadd.f32 %v3920_v16, %v2267_v57 }
 0x914   : > { %v3310_v35 = vpop.f32.mrf.mxu1 }
 0x915   : > { %2737 = vst [vmem:[%s3932_s10 + $0x48] sm:$0xff] %v2697_v54   ;;  %v2692_v12 = vpack.c.bf16 %v2268_v58, %v2265_v33  ;;  %v2289_v23 = vadd.f32 %v3310_v35, %v3920_v16 }
 0x916   : > { %v2280_v13 = vpop.f32.mrf.mxu1 }
 0x917   : > { %2736 = vst [vmem:[%s3932_s10 + $0x40] sm:$0xff] %v2692_v12   ;;  %v2281_v37 = vadd.f32 %v3920_v16, %v2280_v13 }
 0x918   : > { %v3311_v15 = vpop.f32.mrf.mxu1 }
 0x919   : > { %v2292_v36 = vadd.f32 %v3311_v15, %v3920_v16 }
 0x91a   : > { %v2283_v63 = vpop.f32.mrf.mxu1 }
 0x91b   : > { %v2707_v38 = vpack.c.bf16 %v2292_v36, %v2289_v23  ;;  %v2284_v39 = vadd.f32 %v3920_v16, %v2283_v63 }
 0x91c   : > { %v3314_v42 = vpop.f32.mrf.mxu1 }
 0x91d   : > { %2739 = vst [vmem:[%s3932_s10 + $0x58] sm:$0xff] %v2707_v38   ;;  %v2702_v4 = vpack.c.bf16 %v2284_v39, %v2281_v37  ;;  %v2305_v47 = vadd.f32 %v3314_v42, %v3920_v16 }
 0x91e   : > { %v2296_v45 = vpop.f32.mrf.mxu1 }
 0x91f   : > { %2738 = vst [vmem:[%s3932_s10 + $0x50] sm:$0xff] %v2702_v4   ;;  %v2297_v50 = vadd.f32 %v3920_v16, %v2296_v45 }
 0x920   : > { %v3315_v46 = vpop.f32.mrf.mxu1 }
 0x921   : > { %v2308_v48 = vadd.f32 %v3315_v46, %v3920_v16 }
 0x922   : > { %v2299_v49 = vpop.f32.mrf.mxu1 }
 0x923   : > { %v2717_v51 = vpack.c.bf16 %v2308_v48, %v2305_v47  ;;  %v2300_v52 = vadd.f32 %v3920_v16, %v2299_v49 }
 0x924   : > { %v3318_v7 = vpop.f32.mrf.mxu1 }
 0x925   : > { %2741 = vst [vmem:[%s3932_s10 + $0x68] sm:$0xff] %v2717_v51   ;;  %v2712_v53 = vpack.c.bf16 %v2300_v52, %v2297_v50  ;;  %v2321_v21 = vadd.f32 %v3318_v7, %v3920_v16 }
 0x926   : > { %v2312_v27 = vpop.f32.mrf.mxu1 }
 0x927   : > { %2740 = vst [vmem:[%s3932_s10 + $0x60] sm:$0xff] %v2712_v53   ;;  %v2313_v59 = vadd.f32 %v3920_v16, %v2312_v27 }
 0x928   : > { %v3319_v29 = vpop.f32.mrf.mxu1 }
 0x929   : > { %v2324_v56 = vadd.f32 %v3319_v29, %v3920_v16 }
 0x92a   : > { %v2315_v26 = vpop.f32.mrf.mxu1 }
 0x92b   : > { %v2727_v8 = vpack.c.bf16 %v2324_v56, %v2321_v21  ;;  %v2316_v31 = vadd.f32 %v3920_v16, %v2315_v26 }
 0x92d   : > { %2743 = vst [vmem:[%s3932_s10 + $0x78] sm:$0xff] %v2727_v8   ;;  %v2722_v25 = vpack.c.bf16 %v2316_v31, %v2313_v59 }
 0x92f   : > { %2742 = vst [vmem:[%s3932_s10 + $0x70] sm:$0xff] %v2722_v25  }
 0x930 PF: > { %s18_s27 = sadd.s32 1, %s3413_s27  }
 0x931   : > { %p15_p4 = scmp.ge.s32.totalorder %s18_s27, 4  }
 0x933   :  { %17 = sbr.rel (!%p15_p4) target bundleno = 1 (0x1), region = 84 }

</bundles_post_ra>
